<compile_context>
chip_gen: v5e
topology: v5e:2x2
jax: 0.10.0
libtpu: 0.0.40
codegen_flags: <defaults>
</compile_context>

<pallas_src>
import math
import jax
import jax.numpy as jnp
from jax.experimental import pallas as pl
from jax.experimental.pallas import tpu as pltpu

EPS = 1e-5
NEG = -1e9


def _layer_norm(x, w, b):
    # x: (R, D), w/b: (1, D) -- kept in f32 on all chips.
    mean = jnp.mean(x, axis=-1, keepdims=True)
    var = jnp.mean(jnp.square(x - mean), axis=-1, keepdims=True)
    return (x - mean) * jax.lax.rsqrt(var + EPS) * w + b


def _vmem_budget_bytes():
    """~80% of per-core VMEM (128 MiB v5e/v6e, 64 MiB v7x); conservative fallback."""
    phys = 64 * 1024 * 1024
    try:
        phys = int(getattr(pltpu.get_tpu_info(), "vmem_capacity_bytes", phys))
    except Exception:
        pass
    return int(phys * 0.8)


def _pick_bblk(batch, seq, d_model, ffn, layer_weight_bytes, vmem_budget,
               ffn_chunk, max_rows=2048):
    """Largest divisor of `batch` whose per-step VMEM footprint fits the budget.

    Larger BS = bblk*seq amortizes the per-layer weight-slab DMA (the kernel is
    weight-DMA bound at small BS).  Capped at ~max_rows rows; keeps >= 2 batch blocks
    when possible so the 'parallel' axis can be sharded across v7x's 2 TensorCores.
    """
    divisors = [c for c in range(1, batch + 1) if batch % c == 0]

    def est(bblk):
        bs = bblk * seq
        act = bs * d_model * 4
        e = 2 * layer_weight_bytes              # double-buffered per-layer weight slab
        e += 4 * act                            # x input block + resident output block
        e += 2 * bblk * seq * 4                 # additive key mask block
        e += 8 * act                            # LN / QKV / context / residual temps
        e += bblk * seq * seq * 4               # per-head score tensor
        e += bs * min(ffn, ffn_chunk) * 4       # FFN intermediate (one chunk)
        return e

    best = 1
    for c in divisors:
        if c * seq <= max(max_rows, seq) and est(c) <= vmem_budget:
            best = c
    if batch >= 2 and batch // best < 2:        # keep nb >= 2 for the v7x megacore
        smaller = [c for c in divisors if c < best]
        if smaller:
            best = smaller[-1]
    return best


def make_fused_encoder_kernel(num_layers, num_heads, bblk, seq, d_model, ffn,
                              ffn_chunk, use_final_ln, compute_dtype):
    BS = bblk * seq
    dh = d_model // num_heads
    scale = 1.0 / math.sqrt(dh)

    def mm(a, w, b=None):
        # MXU matmul with compute_dtype inputs and f32 accumulation.
        y = jnp.dot(a.astype(compute_dtype), w.astype(compute_dtype),
                    preferred_element_type=jnp.float32)
        if b is not None:
            y = y + b
        return y

    def kernel(x_ref, negm_ref,
               ln1w_ref, ln1b_ref,
               wq_ref, bq_ref, wk_ref, bk_ref, wv_ref, bv_ref, wo_ref, bo_ref,
               ln2w_ref, ln2b_ref,
               w1_ref, b1_ref, w2_ref, b2_ref,
               flnw_ref, flnb_ref,
               out_ref, ctx_ref):
        layer = pl.program_id(1)

        # Layer 0: seed the VMEM-resident output block with the input activations.
        # TODO(synk): on v7x, pass x with memory_space=pl.ANY + sync_copy here so its
        # double-buffered VMEM block is not held live across all layers.
        @pl.when(layer == 0)
        def _():
            out_ref[...] = x_ref[...]

        x = out_ref[...].reshape(BS, d_model)       # residual stream (f32, VMEM-resident)
        negm = negm_ref[...]                        # (bblk, 1, S); broadcast in the add

        # ------------------- self-attention block (pre-norm) -------------------
        h = _layer_norm(x, ln1w_ref[0], ln1b_ref[0])
        q = mm(h, wq_ref[0], bq_ref[0]) * scale     # softmax scale folded into q once
        k = mm(h, wk_ref[0], bk_ref[0])
        v = mm(h, wv_ref[0], bv_ref[0])
        q3 = q.reshape(bblk, seq, d_model)
        k3 = k.reshape(bblk, seq, d_model)
        v3 = v.reshape(bblk, seq, d_model)

        # Per-head scores / softmax / context.  Each head's context is written into its
        # lane slice of a VMEM scratch buffer, then a SINGLE K=d_model output projection
        # is applied (no per-head K=dh matmuls, no per-head (BS,D) accumulate adds).
        # TODO(synk): for dh >= 128, batch heads into single 4-D score/context einsums.
        # TODO(synk): for large S, chunk attention over keys (flash-style online softmax)
        #             to bound the (bblk, S, S) score tensor.
        for hi in range(num_heads):
            lo = hi * dh
            qh = q3[:, :, lo:lo + dh]               # (bblk, S, dh)
            kh = k3[:, :, lo:lo + dh]
            vh = v3[:, :, lo:lo + dh]
            s = jnp.einsum('bqd,bkd->bqk',
                           qh.astype(compute_dtype), kh.astype(compute_dtype),
                           preferred_element_type=jnp.float32)   # (bblk, S, S)
            s = s + negm                            # broadcast (bblk,1,S) -> (bblk,S,S)
            s = s - jnp.max(s, axis=-1, keepdims=True)
            p = jnp.exp(s)
            p = p * pl.reciprocal(jnp.sum(p, axis=-1, keepdims=True), approx=True)
            oh = jnp.einsum('bqk,bkd->bqd',
                            p.astype(compute_dtype), vh.astype(compute_dtype),
                            preferred_element_type=jnp.float32)  # (bblk, S, dh)
            ctx_ref[:, :, lo:lo + dh] = oh
        x = x + mm(ctx_ref[...].reshape(BS, d_model), wo_ref[0], bo_ref[0])

        # --------------------- feed-forward block (pre-norm) -------------------
        h2 = _layer_norm(x, ln2w_ref[0], ln2b_ref[0])
        w1 = w1_ref[0]
        b1 = b1_ref[0]
        w2 = w2_ref[0]
        ffn_acc = jnp.zeros((BS, d_model), jnp.float32)
        # Chunk the F dimension: the intermediate never exceeds (BS, ffn_chunk) of VMEM.
        # TODO(synk): for very large F, move the F chunks onto a grid axis so the w1/w2
        #             weight DMA itself is tiled as well (needed for v7x at F >= 8K).
        for fs in range(0, ffn, ffn_chunk):
            fe = min(fs + ffn_chunk, ffn)
            fc = jnp.maximum(mm(h2, w1[:, fs:fe]) + b1[:, fs:fe], 0.0)
            ffn_acc = ffn_acc + mm(fc, w2[fs:fe, :])
        x = x + ffn_acc + b2_ref[0]

        out_ref[...] = x.reshape(bblk, seq, d_model)

        if use_final_ln:
            @pl.when(layer == num_layers - 1)
            def _():
                y = _layer_norm(x, flnw_ref[...], flnb_ref[...])
                out_ref[...] = y.reshape(bblk, seq, d_model)

    return kernel


def transformer_encoder_layers(x, is_padding_mask, params, num_heads,
                               use_final_layer_norm,
                               compute_dtype=jnp.bfloat16, ffn_chunk=512):
    B, S, D = x.shape
    L, _, F = params["w1_t"].shape
    x = x.astype(jnp.float32)

    # Matmul weights are stored/streamed at compute precision (bf16 by default): halves
    # weight-slab HBM traffic and hits native MXU rates.  Biases / LN params stay f32.
    def wcast(a):
        return a.astype(compute_dtype)

    stacked = [
        params["ln1_w"], params["ln1_b"],
        wcast(params["wq_t"]), params["bq"], wcast(params["wk_t"]), params["bk"],
        wcast(params["wv_t"]), params["bv"], wcast(params["wo_t"]), params["bo"],
        params["ln2_w"], params["ln2_b"],
        wcast(params["w1_t"]), params["b1"], wcast(params["w2_t"]), params["b2"],
    ]
    layer_weight_bytes = sum(int(a.nbytes) // L for a in stacked)

    vmem_budget = _vmem_budget_bytes()
    bblk = _pick_bblk(B, S, D, F, layer_weight_bytes, vmem_budget, ffn_chunk)
    nb = B // bblk

    # Additive key mask, computed once outside the kernel: (B, 1, S).
    negm = (NEG * is_padding_mask.astype(jnp.float32)).reshape(B, 1, S)

    def layer_spec(arr):
        # (L, a, b) stacked weights: one layer's slab per grid step along axis 1.
        # TODO(synk): on v6e, pipeline_mode=pl.Buffered(3) here if weight DMA is still
        #             exposed after the bf16 switch (do NOT on v7x, 64 MiB VMEM).
        return pl.BlockSpec((1,) + arr.shape[1:], lambda bi, l: (l, 0, 0))

    in_specs = (
        [pl.BlockSpec((bblk, S, D), lambda bi, l: (bi, 0, 0)),   # x (read at layer 0)
         pl.BlockSpec((bblk, 1, S), lambda bi, l: (bi, 0, 0))]   # additive key mask
        + [layer_spec(a) for a in stacked]
        + [pl.BlockSpec((1, D), lambda bi, l: (0, 0)),           # final LN weight
           pl.BlockSpec((1, D), lambda bi, l: (0, 0))]           # final LN bias
    )

    kernel = make_fused_encoder_kernel(L, num_heads, bblk, S, D, F, ffn_chunk,
                                       use_final_layer_norm, compute_dtype)

    return pl.pallas_call(
        kernel,
        out_shape=jax.ShapeDtypeStruct((B, S, D), jnp.float32),
        grid=(nb, L),
        in_specs=in_specs,
        out_specs=pl.BlockSpec((bblk, S, D), lambda bi, l: (bi, 0, 0)),
        scratch_shapes=[pltpu.VMEM((bblk, S, D), jnp.float32)],   # head-context buffer
        compiler_params=pltpu.CompilerParams(
            dimension_semantics=("parallel", "arbitrary"),
            vmem_limit_bytes=vmem_budget),
    )(x, negm, *stacked, params["final_ln_w"], params["final_ln_b"])


# ----------------------- pure-JAX reference (for verification) -----------------------
def reference_forward(x, mask_bool, params, num_heads, use_final_layer_norm):
    def ln(y, w, b):
        mean = y.mean(-1, keepdims=True)
        var = ((y - mean) ** 2).mean(-1, keepdims=True)
        return (y - mean) / jnp.sqrt(var + EPS) * w + b

    B, S, D = x.shape
    dh = D // num_heads
    L = params["wq_t"].shape[0]
    mkey = mask_bool.astype(jnp.float32)[:, None, None, :]  # (B,1,1,S)
    for li in range(L):
        g = lambda name: params[name][li]
        h = ln(x, g("ln1_w"), g("ln1_b"))
        q = h @ g("wq_t") + g("bq")
        k = h @ g("wk_t") + g("bk")
        v = h @ g("wv_t") + g("bv")
        q = q.reshape(B, S, num_heads, dh).transpose(0, 2, 1, 3) / math.sqrt(dh)
        k = k.reshape(B, S, num_heads, dh).transpose(0, 2, 1, 3)
        v = v.reshape(B, S, num_heads, dh).transpose(0, 2, 1, 3)
        s = jnp.einsum("bhqd,bhkd->bhqk", q, k) + NEG * mkey
        p = jax.nn.softmax(s, axis=-1)
        o = jnp.einsum("bhqk,bhkd->bhqd", p, v).transpose(0, 2, 1, 3).reshape(B, S, D)
        x = x + (o @ g("wo_t") + g("bo"))
        h2 = ln(x, g("ln2_w"), g("ln2_b"))
        f = jnp.maximum(h2 @ g("w1_t") + g("b1"), 0.0)
        x = x + (f @ g("w2_t") + g("b2"))
    if use_final_layer_norm:
        x = ln(x, params["final_ln_w"], params["final_ln_b"])
    return x


# ----------------------- deterministic parameter construction -----------------------
def init_params(key, num_layers, d_model, feedforward_size):
    L, D, F = num_layers, d_model, feedforward_size
    key, *ks = jax.random.split(key, 9)

    def rnd(k, shape):
        return 0.05 * jax.random.normal(k, shape, jnp.float32)

    return {
        # Weights stored pre-transposed to (in, out) and stacked along the layer axis.
        "ln1_w": jnp.ones((L, 1, D), jnp.float32),
        "ln1_b": jnp.zeros((L, 1, D), jnp.float32),
        "wq_t": rnd(ks[0], (L, D, D)),
        "bq": rnd(ks[1], (L, 1, D)),
        "wk_t": rnd(ks[2], (L, D, D)),
        "bk": jnp.zeros((L, 1, D), jnp.float32),
        "wv_t": rnd(ks[3], (L, D, D)),
        "bv": jnp.zeros((L, 1, D), jnp.float32),
        "wo_t": rnd(ks[4], (L, D, D)),
        "bo": rnd(ks[5], (L, 1, D)),
        "ln2_w": jnp.ones((L, 1, D), jnp.float32),
        "ln2_b": jnp.zeros((L, 1, D), jnp.float32),
        "w1_t": rnd(ks[6], (L, D, F)),
        "b1": jnp.zeros((L, 1, F), jnp.float32),
        "w2_t": rnd(ks[7], (L, F, D)),
        "b2": jnp.zeros((L, 1, D), jnp.float32),
        "final_ln_w": jnp.ones((1, D), jnp.float32),
        "final_ln_b": jnp.zeros((1, D), jnp.float32),
    }


if __name__ == "__main__":
    # module config: num_layers=2, d_model=32, num_heads=4, feedforward_size=64,
    # dropout=0.0 (eval semantics), use_final_layer_norm=True
    num_layers, d_model, num_heads, ff = 2, 32, 4, 64
    batch, seq = 2, 8

    key = jax.random.PRNGKey(0)
    k_x, k_p = jax.random.split(key)
    x = jax.random.normal(k_x, (batch, seq, d_model), jnp.float32)
    # positions >= length are padding
    lengths = jnp.array([8, 5], jnp.int32)
    is_padding_mask = jnp.arange(seq)[None, :] >= lengths[:, None]   # (B, S) bool

    params = init_params(k_p, num_layers, d_model, ff)
    ref = reference_forward(x, is_padding_mask, params, num_heads, True)

    # Exact-precision path (f32 matmul inputs) for verification.
    out_f32 = jax.block_until_ready(
        transformer_encoder_layers(x, is_padding_mask, params, num_heads, True,
                                   compute_dtype=jnp.float32))
    assert out_f32.shape == (batch, seq, d_model)
    # Tolerance accounts for the approximate (EUP) reciprocal in the softmax denom.
    assert bool(jnp.allclose(out_f32, ref, atol=1e-3, rtol=1e-3)), "f32 mismatch vs ref"

    # Production path (bf16 weights + matmul inputs, f32 accumulation / LN / softmax).
    out_bf16 = jax.block_until_ready(
        transformer_encoder_layers(x, is_padding_mask, params, num_heads, True,
                                   compute_dtype=jnp.bfloat16))
    assert out_bf16.shape == (batch, seq, d_model)
    assert bool(jnp.allclose(out_bf16, ref, atol=3e-2, rtol=3e-2)), "bf16 mismatch vs ref"

    print("KERNEL_OK")
</pallas_src>

<mosaic_0001>
module attributes {stable_mosaic.version = 11 : i64} {
  func.func @kernel(%arg0: i32, %arg1: i32, %arg2: memref<1x8x32xf32, #tpu.memory_space<vmem>>, %arg3: memref<1x1x8xf32, #tpu.memory_space<vmem>>, %arg4: memref<1x1x32xf32, #tpu.memory_space<vmem>>, %arg5: memref<1x1x32xf32, #tpu.memory_space<vmem>>, %arg6: memref<1x32x32xf32, #tpu.memory_space<vmem>>, %arg7: memref<1x1x32xf32, #tpu.memory_space<vmem>>, %arg8: memref<1x32x32xf32, #tpu.memory_space<vmem>>, %arg9: memref<1x1x32xf32, #tpu.memory_space<vmem>>, %arg10: memref<1x32x32xf32, #tpu.memory_space<vmem>>, %arg11: memref<1x1x32xf32, #tpu.memory_space<vmem>>, %arg12: memref<1x32x32xf32, #tpu.memory_space<vmem>>, %arg13: memref<1x1x32xf32, #tpu.memory_space<vmem>>, %arg14: memref<1x1x32xf32, #tpu.memory_space<vmem>>, %arg15: memref<1x1x32xf32, #tpu.memory_space<vmem>>, %arg16: memref<1x32x64xf32, #tpu.memory_space<vmem>>, %arg17: memref<1x1x64xf32, #tpu.memory_space<vmem>>, %arg18: memref<1x64x32xf32, #tpu.memory_space<vmem>>, %arg19: memref<1x1x32xf32, #tpu.memory_space<vmem>>, %arg20: memref<1x32xf32, #tpu.memory_space<vmem>>, %arg21: memref<1x32xf32, #tpu.memory_space<vmem>>, %arg22: memref<1x8x32xf32, #tpu.memory_space<vmem>>, %arg23: memref<1x8x32xf32, #tpu.memory_space<vmem>>) attributes {dimension_semantics = [#tpu.dimension_semantics<parallel>, #tpu.dimension_semantics<arbitrary>], iteration_bounds = array<i64: 2, 2>, scalar_prefetch = 0 : i64, scratch_operands = 1 : i64, tpu.core_type = #tpu.core_type<tc>, window_params = [{transform_indices = @transform_0, window_bounds = array<i64: 1, 8, 32>}, {transform_indices = @transform_1, window_bounds = array<i64: 1, 1, 8>}, {transform_indices = @transform_2, window_bounds = array<i64: 1, 1, 32>}, {transform_indices = @transform_3, window_bounds = array<i64: 1, 1, 32>}, {transform_indices = @transform_4, window_bounds = array<i64: 1, 32, 32>}, {transform_indices = @transform_5, window_bounds = array<i64: 1, 1, 32>}, {transform_indices = @transform_6, window_bounds = array<i64: 1, 32, 32>}, {transform_indices = @transform_7, window_bounds = array<i64: 1, 1, 32>}, {transform_indices = @transform_8, window_bounds = array<i64: 1, 32, 32>}, {transform_indices = @transform_9, window_bounds = array<i64: 1, 1, 32>}, {transform_indices = @transform_10, window_bounds = array<i64: 1, 32, 32>}, {transform_indices = @transform_11, window_bounds = array<i64: 1, 1, 32>}, {transform_indices = @transform_12, window_bounds = array<i64: 1, 1, 32>}, {transform_indices = @transform_13, window_bounds = array<i64: 1, 1, 32>}, {transform_indices = @transform_14, window_bounds = array<i64: 1, 32, 64>}, {transform_indices = @transform_15, window_bounds = array<i64: 1, 1, 64>}, {transform_indices = @transform_16, window_bounds = array<i64: 1, 64, 32>}, {transform_indices = @transform_17, window_bounds = array<i64: 1, 1, 32>}, {pipeline_mode = #tpu.pipeline_mode<synchronous>, transform_indices = @transform_18, window_bounds = array<i64: 1, 32>}, {pipeline_mode = #tpu.pipeline_mode<synchronous>, transform_indices = @transform_19, window_bounds = array<i64: 1, 32>}, {transform_indices = @transform_20, window_bounds = array<i64: 1, 8, 32>}]} {
    %c0_i32 = arith.constant 0 : i32
    %0 = arith.cmpi eq, %arg1, %c0_i32 : i32
    %1 = arith.extui %0 : i1 to i32
    %c0_i32_0 = arith.constant 0 : i32
    %2 = arith.cmpi ne, %1, %c0_i32_0 : i32
    scf.if %2 {
      %c0_104 = arith.constant 0 : index
      %c0_105 = arith.constant 0 : index
      %c0_106 = arith.constant 0 : index
      %190 = vector.load %arg2[%c0_104, %c0_105, %c0_106] : memref<1x8x32xf32, #tpu.memory_space<vmem>>, vector<1x8x32xf32>
      %c0_107 = arith.constant 0 : index
      %c0_108 = arith.constant 0 : index
      %c0_109 = arith.constant 0 : index
      %191 = vector.load %arg22[%c0_107, %c0_108, %c0_109] : memref<1x8x32xf32, #tpu.memory_space<vmem>>, vector<1x8x32xf32>
      tpu.vector_store %arg22[%c0_107, %c0_108, %c0_109], %190 {strides = array<i32>} : memref<1x8x32xf32, #tpu.memory_space<vmem>>, vector<1x8x32xf32>,
    } else {
    }
    %c0 = arith.constant 0 : index
    %c0_1 = arith.constant 0 : index
    %c0_2 = arith.constant 0 : index
    %3 = vector.load %arg22[%c0, %c0_1, %c0_2] : memref<1x8x32xf32, #tpu.memory_space<vmem>>, vector<1x8x32xf32>
    %4 = vector.shape_cast %3 : vector<1x8x32xf32> to vector<8x32xf32>
    %c0_3 = arith.constant 0 : index
    %c0_4 = arith.constant 0 : index
    %c0_5 = arith.constant 0 : index
    %5 = vector.load %arg3[%c0_3, %c0_4, %c0_5] : memref<1x1x8xf32, #tpu.memory_space<vmem>>, vector<1x1x8xf32>
    %c0_6 = arith.constant 0 : index
    %c0_7 = arith.constant 0 : index
    %c0_8 = arith.constant 0 : index
    %6 = vector.load %arg4[%c0_6, %c0_7, %c0_8] : memref<1x1x32xf32, #tpu.memory_space<vmem>>, vector<1x1x32xf32>
    %7 = vector.shape_cast %6 : vector<1x1x32xf32> to vector<1x32xf32>
    %c0_9 = arith.constant 0 : index
    %c0_10 = arith.constant 0 : index
    %c0_11 = arith.constant 0 : index
    %8 = vector.load %arg5[%c0_9, %c0_10, %c0_11] : memref<1x1x32xf32, #tpu.memory_space<vmem>>, vector<1x1x32xf32>
    %9 = vector.shape_cast %8 : vector<1x1x32xf32> to vector<1x32xf32>
    %cst = arith.constant dense<0.000000e+00> : vector<8xf32>
    %10 = vector.multi_reduction <add>, %4, %cst [1] : vector<8x32xf32> to vector<8xf32>
    %11 = vector.shape_cast %10 : vector<8xf32> to vector<8x1xf32>
    %cst_12 = arith.constant 3.200000e+01 : f32
    %12 = vector.broadcast %cst_12 : f32 to vector<8x1xf32>
    %13 = arith.divf %11, %12 : vector<8x1xf32>
    %14 = vector.broadcast %13 : vector<8x1xf32> to vector<8x32xf32>
    %15 = arith.subf %4, %14 : vector<8x32xf32>
    %16 = arith.mulf %15, %15 : vector<8x32xf32>
    %cst_13 = arith.constant dense<0.000000e+00> : vector<8xf32>
    %17 = vector.multi_reduction <add>, %16, %cst_13 [1] : vector<8x32xf32> to vector<8xf32>
    %18 = vector.shape_cast %17 : vector<8xf32> to vector<8x1xf32>
    %cst_14 = arith.constant 3.200000e+01 : f32
    %19 = vector.broadcast %cst_14 : f32 to vector<8x1xf32>
    %20 = arith.divf %18, %19 : vector<8x1xf32>
    %21 = vector.broadcast %13 : vector<8x1xf32> to vector<8x32xf32>
    %22 = arith.subf %4, %21 : vector<8x32xf32>
    %cst_15 = arith.constant 9.99999974E-6 : f32
    %23 = vector.broadcast %cst_15 : f32 to vector<8x1xf32>
    %24 = arith.addf %20, %23 : vector<8x1xf32>
    %25 = math.rsqrt %24 : vector<8x1xf32>
    %26 = vector.broadcast %25 : vector<8x1xf32> to vector<8x32xf32>
    %27 = arith.mulf %22, %26 : vector<8x32xf32>
    %28 = vector.broadcast %7 : vector<1x32xf32> to vector<8x32xf32>
    %29 = arith.mulf %27, %28 : vector<8x32xf32>
    %30 = vector.broadcast %9 : vector<1x32xf32> to vector<8x32xf32>
    %31 = arith.addf %29, %30 : vector<8x32xf32>
    %c0_16 = arith.constant 0 : index
    %c0_17 = arith.constant 0 : index
    %c0_18 = arith.constant 0 : index
    %32 = vector.load %arg6[%c0_16, %c0_17, %c0_18] : memref<1x32x32xf32, #tpu.memory_space<vmem>>, vector<1x32x32xf32>
    %33 = vector.shape_cast %32 : vector<1x32x32xf32> to vector<32x32xf32>
    %c0_19 = arith.constant 0 : index
    %c0_20 = arith.constant 0 : index
    %c0_21 = arith.constant 0 : index
    %34 = vector.load %arg7[%c0_19, %c0_20, %c0_21] : memref<1x1x32xf32, #tpu.memory_space<vmem>>, vector<1x1x32xf32>
    %35 = vector.shape_cast %34 : vector<1x1x32xf32> to vector<1x32xf32>
    %cst_22 = arith.constant dense<0.000000e+00> : vector<8x32xf32>
    %36 = tpu.matmul %31, %33, %cst_22 {dimension_numbers = #tpu.dot_dimension_numbers<[1], [0], [0], [1], [0, 0, 1, 1], [], []>} : vector<8x32xf32>, vector<32x32xf32>, vector<8x32xf32> -> vector<8x32xf32>
    %37 = vector.broadcast %35 : vector<1x32xf32> to vector<8x32xf32>
    %38 = arith.addf %36, %37 : vector<8x32xf32>
    %cst_23 = arith.constant 0.353553385 : f32
    %39 = vector.broadcast %cst_23 : f32 to vector<8x32xf32>
    %40 = arith.mulf %38, %39 : vector<8x32xf32>
    %c0_24 = arith.constant 0 : index
    %c0_25 = arith.constant 0 : index
    %c0_26 = arith.constant 0 : index
    %41 = vector.load %arg8[%c0_24, %c0_25, %c0_26] : memref<1x32x32xf32, #tpu.memory_space<vmem>>, vector<1x32x32xf32>
    %42 = vector.shape_cast %41 : vector<1x32x32xf32> to vector<32x32xf32>
    %c0_27 = arith.constant 0 : index
    %c0_28 = arith.constant 0 : index
    %c0_29 = arith.constant 0 : index
    %43 = vector.load %arg9[%c0_27, %c0_28, %c0_29] : memref<1x1x32xf32, #tpu.memory_space<vmem>>, vector<1x1x32xf32>
    %44 = vector.shape_cast %43 : vector<1x1x32xf32> to vector<1x32xf32>
    %cst_30 = arith.constant dense<0.000000e+00> : vector<8x32xf32>
    %45 = tpu.matmul %31, %42, %cst_30 {dimension_numbers = #tpu.dot_dimension_numbers<[1], [0], [0], [1], [0, 0, 1, 1], [], []>} : vector<8x32xf32>, vector<32x32xf32>, vector<8x32xf32> -> vector<8x32xf32>
    %46 = vector.broadcast %44 : vector<1x32xf32> to vector<8x32xf32>
    %47 = arith.addf %45, %46 : vector<8x32xf32>
    %c0_31 = arith.constant 0 : index
    %c0_32 = arith.constant 0 : index
    %c0_33 = arith.constant 0 : index
    %48 = vector.load %arg10[%c0_31, %c0_32, %c0_33] : memref<1x32x32xf32, #tpu.memory_space<vmem>>, vector<1x32x32xf32>
    %49 = vector.shape_cast %48 : vector<1x32x32xf32> to vector<32x32xf32>
    %c0_34 = arith.constant 0 : index
    %c0_35 = arith.constant 0 : index
    %c0_36 = arith.constant 0 : index
    %50 = vector.load %arg11[%c0_34, %c0_35, %c0_36] : memref<1x1x32xf32, #tpu.memory_space<vmem>>, vector<1x1x32xf32>
    %51 = vector.shape_cast %50 : vector<1x1x32xf32> to vector<1x32xf32>
    %cst_37 = arith.constant dense<0.000000e+00> : vector<8x32xf32>
    %52 = tpu.matmul %31, %49, %cst_37 {dimension_numbers = #tpu.dot_dimension_numbers<[1], [0], [0], [1], [0, 0, 1, 1], [], []>} : vector<8x32xf32>, vector<32x32xf32>, vector<8x32xf32> -> vector<8x32xf32>
    %53 = vector.broadcast %51 : vector<1x32xf32> to vector<8x32xf32>
    %54 = arith.addf %52, %53 : vector<8x32xf32>
    %55 = vector.shape_cast %40 : vector<8x32xf32> to vector<1x8x32xf32>
    %56 = vector.shape_cast %47 : vector<8x32xf32> to vector<1x8x32xf32>
    %57 = vector.shape_cast %54 : vector<8x32xf32> to vector<1x8x32xf32>
    %58 = vector.extract_strided_slice %55 {offsets = [0, 0, 0], sizes = [1, 8, 8], strides = [1, 1, 1]} : vector<1x8x32xf32> to vector<1x8x8xf32>
    %59 = vector.extract_strided_slice %56 {offsets = [0, 0, 0], sizes = [1, 8, 8], strides = [1, 1, 1]} : vector<1x8x32xf32> to vector<1x8x8xf32>
    %60 = vector.extract_strided_slice %57 {offsets = [0, 0, 0], sizes = [1, 8, 8], strides = [1, 1, 1]} : vector<1x8x32xf32> to vector<1x8x8xf32>
    "tpu.trace_start"() <{level = 10 : i32, message = "bqd,bkd->bqk"}> : () -> ()
    %cst_38 = arith.constant dense<0.000000e+00> : vector<1x8x8xf32>
    %61 = tpu.matmul %58, %59, %cst_38 {dimension_numbers = #tpu.dot_dimension_numbers<[2], [2], [1], [1], [0, 0, 0, 1, 1, 1], [0], [0]>} : vector<1x8x8xf32>, vector<1x8x8xf32>, vector<1x8x8xf32> -> vector<1x8x8xf32>
    "tpu.trace_stop"() : () -> ()
    %62 = vector.broadcast %5 : vector<1x1x8xf32> to vector<1x8x8xf32>
    %63 = arith.addf %61, %62 : vector<1x8x8xf32>
    %cst_39 = arith.constant dense<0xFF800000> : vector<1x8xf32>
    %64 = vector.multi_reduction <maximumf>, %63, %cst_39 [2] : vector<1x8x8xf32> to vector<1x8xf32>
    %65 = vector.shape_cast %64 : vector<1x8xf32> to vector<1x8x1xf32>
    %66 = vector.broadcast %65 : vector<1x8x1xf32> to vector<1x8x8xf32>
    %67 = arith.subf %63, %66 : vector<1x8x8xf32>
    %68 = math.exp %67 : vector<1x8x8xf32>
    %cst_40 = arith.constant dense<0.000000e+00> : vector<1x8xf32>
    %69 = vector.multi_reduction <add>, %68, %cst_40 [2] : vector<1x8x8xf32> to vector<1x8xf32>
    %70 = vector.shape_cast %69 : vector<1x8xf32> to vector<1x8x1xf32>
    %71 = tpu.reciprocal %70 {approx = true} : vector<1x8x1xf32> -> vector<1x8x1xf32>
    %72 = vector.broadcast %71 : vector<1x8x1xf32> to vector<1x8x8xf32>
    %73 = arith.mulf %68, %72 : vector<1x8x8xf32>
    "tpu.trace_start"() <{level = 10 : i32, message = "bqk,bkd->bqd"}> : () -> ()
    %cst_41 = arith.constant dense<0.000000e+00> : vector<1x8x8xf32>
    %74 = tpu.matmul %73, %60, %cst_41 {dimension_numbers = #tpu.dot_dimension_numbers<[2], [1], [1], [2], [0, 0, 0, 1, 1, 2], [0], [0]>} : vector<1x8x8xf32>, vector<1x8x8xf32>, vector<1x8x8xf32> -> vector<1x8x8xf32>
    "tpu.trace_stop"() : () -> ()
    %c0_42 = arith.constant 0 : index
    %c0_43 = arith.constant 0 : index
    %c0_44 = arith.constant 0 : index
    %75 = vector.load %arg23[%c0_42, %c0_43, %c0_44] : memref<1x8x32xf32, #tpu.memory_space<vmem>>, vector<1x8x8xf32>
    tpu.vector_store %arg23[%c0_42, %c0_43, %c0_44], %74 {strides = array<i32>} : memref<1x8x32xf32, #tpu.memory_space<vmem>>, vector<1x8x8xf32>,
    %76 = vector.extract_strided_slice %55 {offsets = [0, 0, 8], sizes = [1, 8, 8], strides = [1, 1, 1]} : vector<1x8x32xf32> to vector<1x8x8xf32>
    %77 = vector.extract_strided_slice %56 {offsets = [0, 0, 8], sizes = [1, 8, 8], strides = [1, 1, 1]} : vector<1x8x32xf32> to vector<1x8x8xf32>
    %78 = vector.extract_strided_slice %57 {offsets = [0, 0, 8], sizes = [1, 8, 8], strides = [1, 1, 1]} : vector<1x8x32xf32> to vector<1x8x8xf32>
    "tpu.trace_start"() <{level = 10 : i32, message = "bqd,bkd->bqk"}> : () -> ()
    %cst_45 = arith.constant dense<0.000000e+00> : vector<1x8x8xf32>
    %79 = tpu.matmul %76, %77, %cst_45 {dimension_numbers = #tpu.dot_dimension_numbers<[2], [2], [1], [1], [0, 0, 0, 1, 1, 1], [0], [0]>} : vector<1x8x8xf32>, vector<1x8x8xf32>, vector<1x8x8xf32> -> vector<1x8x8xf32>
    "tpu.trace_stop"() : () -> ()
    %80 = vector.broadcast %5 : vector<1x1x8xf32> to vector<1x8x8xf32>
    %81 = arith.addf %79, %80 : vector<1x8x8xf32>
    %cst_46 = arith.constant dense<0xFF800000> : vector<1x8xf32>
    %82 = vector.multi_reduction <maximumf>, %81, %cst_46 [2] : vector<1x8x8xf32> to vector<1x8xf32>
    %83 = vector.shape_cast %82 : vector<1x8xf32> to vector<1x8x1xf32>
    %84 = vector.broadcast %83 : vector<1x8x1xf32> to vector<1x8x8xf32>
    %85 = arith.subf %81, %84 : vector<1x8x8xf32>
    %86 = math.exp %85 : vector<1x8x8xf32>
    %cst_47 = arith.constant dense<0.000000e+00> : vector<1x8xf32>
    %87 = vector.multi_reduction <add>, %86, %cst_47 [2] : vector<1x8x8xf32> to vector<1x8xf32>
    %88 = vector.shape_cast %87 : vector<1x8xf32> to vector<1x8x1xf32>
    %89 = tpu.reciprocal %88 {approx = true} : vector<1x8x1xf32> -> vector<1x8x1xf32>
    %90 = vector.broadcast %89 : vector<1x8x1xf32> to vector<1x8x8xf32>
    %91 = arith.mulf %86, %90 : vector<1x8x8xf32>
    "tpu.trace_start"() <{level = 10 : i32, message = "bqk,bkd->bqd"}> : () -> ()
    %cst_48 = arith.constant dense<0.000000e+00> : vector<1x8x8xf32>
    %92 = tpu.matmul %91, %78, %cst_48 {dimension_numbers = #tpu.dot_dimension_numbers<[2], [1], [1], [2], [0, 0, 0, 1, 1, 2], [0], [0]>} : vector<1x8x8xf32>, vector<1x8x8xf32>, vector<1x8x8xf32> -> vector<1x8x8xf32>
    "tpu.trace_stop"() : () -> ()
    %c0_49 = arith.constant 0 : index
    %c0_50 = arith.constant 0 : index
    %c8 = arith.constant 8 : index
    %93 = vector.load %arg23[%c0_49, %c0_50, %c8] : memref<1x8x32xf32, #tpu.memory_space<vmem>>, vector<1x8x8xf32>
    tpu.vector_store %arg23[%c0_49, %c0_50, %c8], %92 {strides = array<i32>} : memref<1x8x32xf32, #tpu.memory_space<vmem>>, vector<1x8x8xf32>,
    %94 = vector.extract_strided_slice %55 {offsets = [0, 0, 16], sizes = [1, 8, 8], strides = [1, 1, 1]} : vector<1x8x32xf32> to vector<1x8x8xf32>
    %95 = vector.extract_strided_slice %56 {offsets = [0, 0, 16], sizes = [1, 8, 8], strides = [1, 1, 1]} : vector<1x8x32xf32> to vector<1x8x8xf32>
    %96 = vector.extract_strided_slice %57 {offsets = [0, 0, 16], sizes = [1, 8, 8], strides = [1, 1, 1]} : vector<1x8x32xf32> to vector<1x8x8xf32>
    "tpu.trace_start"() <{level = 10 : i32, message = "bqd,bkd->bqk"}> : () -> ()
    %cst_51 = arith.constant dense<0.000000e+00> : vector<1x8x8xf32>
    %97 = tpu.matmul %94, %95, %cst_51 {dimension_numbers = #tpu.dot_dimension_numbers<[2], [2], [1], [1], [0, 0, 0, 1, 1, 1], [0], [0]>} : vector<1x8x8xf32>, vector<1x8x8xf32>, vector<1x8x8xf32> -> vector<1x8x8xf32>
    "tpu.trace_stop"() : () -> ()
    %98 = vector.broadcast %5 : vector<1x1x8xf32> to vector<1x8x8xf32>
    %99 = arith.addf %97, %98 : vector<1x8x8xf32>
    %cst_52 = arith.constant dense<0xFF800000> : vector<1x8xf32>
    %100 = vector.multi_reduction <maximumf>, %99, %cst_52 [2] : vector<1x8x8xf32> to vector<1x8xf32>
    %101 = vector.shape_cast %100 : vector<1x8xf32> to vector<1x8x1xf32>
    %102 = vector.broadcast %101 : vector<1x8x1xf32> to vector<1x8x8xf32>
    %103 = arith.subf %99, %102 : vector<1x8x8xf32>
    %104 = math.exp %103 : vector<1x8x8xf32>
    %cst_53 = arith.constant dense<0.000000e+00> : vector<1x8xf32>
    %105 = vector.multi_reduction <add>, %104, %cst_53 [2] : vector<1x8x8xf32> to vector<1x8xf32>
    %106 = vector.shape_cast %105 : vector<1x8xf32> to vector<1x8x1xf32>
    %107 = tpu.reciprocal %106 {approx = true} : vector<1x8x1xf32> -> vector<1x8x1xf32>
    %108 = vector.broadcast %107 : vector<1x8x1xf32> to vector<1x8x8xf32>
    %109 = arith.mulf %104, %108 : vector<1x8x8xf32>
    "tpu.trace_start"() <{level = 10 : i32, message = "bqk,bkd->bqd"}> : () -> ()
    %cst_54 = arith.constant dense<0.000000e+00> : vector<1x8x8xf32>
    %110 = tpu.matmul %109, %96, %cst_54 {dimension_numbers = #tpu.dot_dimension_numbers<[2], [1], [1], [2], [0, 0, 0, 1, 1, 2], [0], [0]>} : vector<1x8x8xf32>, vector<1x8x8xf32>, vector<1x8x8xf32> -> vector<1x8x8xf32>
    "tpu.trace_stop"() : () -> ()
    %c0_55 = arith.constant 0 : index
    %c0_56 = arith.constant 0 : index
    %c16 = arith.constant 16 : index
    %111 = vector.load %arg23[%c0_55, %c0_56, %c16] : memref<1x8x32xf32, #tpu.memory_space<vmem>>, vector<1x8x8xf32>
    tpu.vector_store %arg23[%c0_55, %c0_56, %c16], %110 {strides = array<i32>} : memref<1x8x32xf32, #tpu.memory_space<vmem>>, vector<1x8x8xf32>,
    %112 = vector.extract_strided_slice %55 {offsets = [0, 0, 24], sizes = [1, 8, 8], strides = [1, 1, 1]} : vector<1x8x32xf32> to vector<1x8x8xf32>
    %113 = vector.extract_strided_slice %56 {offsets = [0, 0, 24], sizes = [1, 8, 8], strides = [1, 1, 1]} : vector<1x8x32xf32> to vector<1x8x8xf32>
    %114 = vector.extract_strided_slice %57 {offsets = [0, 0, 24], sizes = [1, 8, 8], strides = [1, 1, 1]} : vector<1x8x32xf32> to vector<1x8x8xf32>
    "tpu.trace_start"() <{level = 10 : i32, message = "bqd,bkd->bqk"}> : () -> ()
    %cst_57 = arith.constant dense<0.000000e+00> : vector<1x8x8xf32>
    %115 = tpu.matmul %112, %113, %cst_57 {dimension_numbers = #tpu.dot_dimension_numbers<[2], [2], [1], [1], [0, 0, 0, 1, 1, 1], [0], [0]>} : vector<1x8x8xf32>, vector<1x8x8xf32>, vector<1x8x8xf32> -> vector<1x8x8xf32>
    "tpu.trace_stop"() : () -> ()
    %116 = vector.broadcast %5 : vector<1x1x8xf32> to vector<1x8x8xf32>
    %117 = arith.addf %115, %116 : vector<1x8x8xf32>
    %cst_58 = arith.constant dense<0xFF800000> : vector<1x8xf32>
    %118 = vector.multi_reduction <maximumf>, %117, %cst_58 [2] : vector<1x8x8xf32> to vector<1x8xf32>
    %119 = vector.shape_cast %118 : vector<1x8xf32> to vector<1x8x1xf32>
    %120 = vector.broadcast %119 : vector<1x8x1xf32> to vector<1x8x8xf32>
    %121 = arith.subf %117, %120 : vector<1x8x8xf32>
    %122 = math.exp %121 : vector<1x8x8xf32>
    %cst_59 = arith.constant dense<0.000000e+00> : vector<1x8xf32>
    %123 = vector.multi_reduction <add>, %122, %cst_59 [2] : vector<1x8x8xf32> to vector<1x8xf32>
    %124 = vector.shape_cast %123 : vector<1x8xf32> to vector<1x8x1xf32>
    %125 = tpu.reciprocal %124 {approx = true} : vector<1x8x1xf32> -> vector<1x8x1xf32>
    %126 = vector.broadcast %125 : vector<1x8x1xf32> to vector<1x8x8xf32>
    %127 = arith.mulf %122, %126 : vector<1x8x8xf32>
    "tpu.trace_start"() <{level = 10 : i32, message = "bqk,bkd->bqd"}> : () -> ()
    %cst_60 = arith.constant dense<0.000000e+00> : vector<1x8x8xf32>
    %128 = tpu.matmul %127, %114, %cst_60 {dimension_numbers = #tpu.dot_dimension_numbers<[2], [1], [1], [2], [0, 0, 0, 1, 1, 2], [0], [0]>} : vector<1x8x8xf32>, vector<1x8x8xf32>, vector<1x8x8xf32> -> vector<1x8x8xf32>
    "tpu.trace_stop"() : () -> ()
    %c0_61 = arith.constant 0 : index
    %c0_62 = arith.constant 0 : index
    %c24 = arith.constant 24 : index
    %129 = vector.load %arg23[%c0_61, %c0_62, %c24] : memref<1x8x32xf32, #tpu.memory_space<vmem>>, vector<1x8x8xf32>
    tpu.vector_store %arg23[%c0_61, %c0_62, %c24], %128 {strides = array<i32>} : memref<1x8x32xf32, #tpu.memory_space<vmem>>, vector<1x8x8xf32>,
    %c0_63 = arith.constant 0 : index
    %c0_64 = arith.constant 0 : index
    %c0_65 = arith.constant 0 : index
    %130 = vector.load %arg23[%c0_63, %c0_64, %c0_65] : memref<1x8x32xf32, #tpu.memory_space<vmem>>, vector<1x8x32xf32>
    %131 = vector.shape_cast %130 : vector<1x8x32xf32> to vector<8x32xf32>
    %c0_66 = arith.constant 0 : index
    %c0_67 = arith.constant 0 : index
    %c0_68 = arith.constant 0 : index
    %132 = vector.load %arg12[%c0_66, %c0_67, %c0_68] : memref<1x32x32xf32, #tpu.memory_space<vmem>>, vector<1x32x32xf32>
    %133 = vector.shape_cast %132 : vector<1x32x32xf32> to vector<32x32xf32>
    %c0_69 = arith.constant 0 : index
    %c0_70 = arith.constant 0 : index
    %c0_71 = arith.constant 0 : index
    %134 = vector.load %arg13[%c0_69, %c0_70, %c0_71] : memref<1x1x32xf32, #tpu.memory_space<vmem>>, vector<1x1x32xf32>
    %135 = vector.shape_cast %134 : vector<1x1x32xf32> to vector<1x32xf32>
    %cst_72 = arith.constant dense<0.000000e+00> : vector<8x32xf32>
    %136 = tpu.matmul %131, %133, %cst_72 {dimension_numbers = #tpu.dot_dimension_numbers<[1], [0], [0], [1], [0, 0, 1, 1], [], []>} : vector<8x32xf32>, vector<32x32xf32>, vector<8x32xf32> -> vector<8x32xf32>
    %137 = vector.broadcast %135 : vector<1x32xf32> to vector<8x32xf32>
    %138 = arith.addf %136, %137 : vector<8x32xf32>
    %139 = arith.addf %4, %138 : vector<8x32xf32>
    %c0_73 = arith.constant 0 : index
    %c0_74 = arith.constant 0 : index
    %c0_75 = arith.constant 0 : index
    %140 = vector.load %arg14[%c0_73, %c0_74, %c0_75] : memref<1x1x32xf32, #tpu.memory_space<vmem>>, vector<1x1x32xf32>
    %141 = vector.shape_cast %140 : vector<1x1x32xf32> to vector<1x32xf32>
    %c0_76 = arith.constant 0 : index
    %c0_77 = arith.constant 0 : index
    %c0_78 = arith.constant 0 : index
    %142 = vector.load %arg15[%c0_76, %c0_77, %c0_78] : memref<1x1x32xf32, #tpu.memory_space<vmem>>, vector<1x1x32xf32>
    %143 = vector.shape_cast %142 : vector<1x1x32xf32> to vector<1x32xf32>
    %cst_79 = arith.constant dense<0.000000e+00> : vector<8xf32>
    %144 = vector.multi_reduction <add>, %139, %cst_79 [1] : vector<8x32xf32> to vector<8xf32>
    %145 = vector.shape_cast %144 : vector<8xf32> to vector<8x1xf32>
    %cst_80 = arith.constant 3.200000e+01 : f32
    %146 = vector.broadcast %cst_80 : f32 to vector<8x1xf32>
    %147 = arith.divf %145, %146 : vector<8x1xf32>
    %148 = vector.broadcast %147 : vector<8x1xf32> to vector<8x32xf32>
    %149 = arith.subf %139, %148 : vector<8x32xf32>
    %150 = arith.mulf %149, %149 : vector<8x32xf32>
    %cst_81 = arith.constant dense<0.000000e+00> : vector<8xf32>
    %151 = vector.multi_reduction <add>, %150, %cst_81 [1] : vector<8x32xf32> to vector<8xf32>
    %152 = vector.shape_cast %151 : vector<8xf32> to vector<8x1xf32>
    %cst_82 = arith.constant 3.200000e+01 : f32
    %153 = vector.broadcast %cst_82 : f32 to vector<8x1xf32>
    %154 = arith.divf %152, %153 : vector<8x1xf32>
    %155 = vector.broadcast %147 : vector<8x1xf32> to vector<8x32xf32>
    %156 = arith.subf %139, %155 : vector<8x32xf32>
    %cst_83 = arith.constant 9.99999974E-6 : f32
    %157 = vector.broadcast %cst_83 : f32 to vector<8x1xf32>
    %158 = arith.addf %154, %157 : vector<8x1xf32>
    %159 = math.rsqrt %158 : vector<8x1xf32>
    %160 = vector.broadcast %159 : vector<8x1xf32> to vector<8x32xf32>
    %161 = arith.mulf %156, %160 : vector<8x32xf32>
    %162 = vector.broadcast %141 : vector<1x32xf32> to vector<8x32xf32>
    %163 = arith.mulf %161, %162 : vector<8x32xf32>
    %164 = vector.broadcast %143 : vector<1x32xf32> to vector<8x32xf32>
    %165 = arith.addf %163, %164 : vector<8x32xf32>
    %c0_84 = arith.constant 0 : index
    %c0_85 = arith.constant 0 : index
    %c0_86 = arith.constant 0 : index
    %166 = vector.load %arg16[%c0_84, %c0_85, %c0_86] : memref<1x32x64xf32, #tpu.memory_space<vmem>>, vector<1x32x64xf32>
    %167 = vector.shape_cast %166 : vector<1x32x64xf32> to vector<32x64xf32>
    %c0_87 = arith.constant 0 : index
    %c0_88 = arith.constant 0 : index
    %c0_89 = arith.constant 0 : index
    %168 = vector.load %arg17[%c0_87, %c0_88, %c0_89] : memref<1x1x64xf32, #tpu.memory_space<vmem>>, vector<1x1x64xf32>
    %169 = vector.shape_cast %168 : vector<1x1x64xf32> to vector<1x64xf32>
    %c0_90 = arith.constant 0 : index
    %c0_91 = arith.constant 0 : index
    %c0_92 = arith.constant 0 : index
    %170 = vector.load %arg18[%c0_90, %c0_91, %c0_92] : memref<1x64x32xf32, #tpu.memory_space<vmem>>, vector<1x64x32xf32>
    %171 = vector.shape_cast %170 : vector<1x64x32xf32> to vector<64x32xf32>
    %cst_93 = arith.constant 0.000000e+00 : f32
    %172 = vector.broadcast %cst_93 : f32 to vector<8x32xf32>
    %cst_94 = arith.constant dense<0.000000e+00> : vector<8x64xf32>
    %173 = tpu.matmul %165, %167, %cst_94 {dimension_numbers = #tpu.dot_dimension_numbers<[1], [0], [0], [1], [0, 0, 1, 1], [], []>} : vector<8x32xf32>, vector<32x64xf32>, vector<8x64xf32> -> vector<8x64xf32>
    %174 = vector.broadcast %169 : vector<1x64xf32> to vector<8x64xf32>
    %175 = arith.addf %173, %174 : vector<8x64xf32>
    %cst_95 = arith.constant 0.000000e+00 : f32
    %176 = vector.broadcast %cst_95 : f32 to vector<8x64xf32>
    %177 = arith.maximumf %175, %176 : vector<8x64xf32>
    %cst_96 = arith.constant dense<0.000000e+00> : vector<8x32xf32>
    %178 = tpu.matmul %177, %171, %cst_96 {dimension_numbers = #tpu.dot_dimension_numbers<[1], [0], [0], [1], [0, 0, 1, 1], [], []>} : vector<8x64xf32>, vector<64x32xf32>, vector<8x32xf32> -> vector<8x32xf32>
    %179 = arith.addf %172, %178 : vector<8x32xf32>
    %180 = arith.addf %139, %179 : vector<8x32xf32>
    %c0_97 = arith.constant 0 : index
    %c0_98 = arith.constant 0 : index
    %c0_99 = arith.constant 0 : index
    %181 = vector.load %arg19[%c0_97, %c0_98, %c0_99] : memref<1x1x32xf32, #tpu.memory_space<vmem>>, vector<1x1x32xf32>
    %182 = vector.shape_cast %181 : vector<1x1x32xf32> to vector<1x32xf32>
    %183 = vector.broadcast %182 : vector<1x32xf32> to vector<8x32xf32>
    %184 = arith.addf %180, %183 : vector<8x32xf32>
    %185 = vector.shape_cast %184 : vector<8x32xf32> to vector<1x8x32xf32>
    %c0_100 = arith.constant 0 : index
    %c0_101 = arith.constant 0 : index
    %c0_102 = arith.constant 0 : index
    %186 = vector.load %arg22[%c0_100, %c0_101, %c0_102] : memref<1x8x32xf32, #tpu.memory_space<vmem>>, vector<1x8x32xf32>
    tpu.vector_store %arg22[%c0_100, %c0_101, %c0_102], %185 {strides = array<i32>} : memref<1x8x32xf32, #tpu.memory_space<vmem>>, vector<1x8x32xf32>,
    %c1_i32 = arith.constant 1 : i32
    %187 = arith.cmpi eq, %arg1, %c1_i32 : i32
    %188 = arith.extui %187 : i1 to i32
    %c0_i32_103 = arith.constant 0 : i32
    %189 = arith.cmpi ne, %188, %c0_i32_103 : i32
    scf.if %189 {
      %c0_104 = arith.constant 0 : index
      %c0_105 = arith.constant 0 : index
      %190 = vector.load %arg20[%c0_104, %c0_105] : memref<1x32xf32, #tpu.memory_space<vmem>>, vector<1x32xf32>
      %c0_106 = arith.constant 0 : index
      %c0_107 = arith.constant 0 : index
      %191 = vector.load %arg21[%c0_106, %c0_107] : memref<1x32xf32, #tpu.memory_space<vmem>>, vector<1x32xf32>
      %cst_108 = arith.constant dense<0.000000e+00> : vector<8xf32>
      %192 = vector.multi_reduction <add>, %184, %cst_108 [1] : vector<8x32xf32> to vector<8xf32>
      %193 = vector.shape_cast %192 : vector<8xf32> to vector<8x1xf32>
      %cst_109 = arith.constant 3.200000e+01 : f32
      %194 = vector.broadcast %cst_109 : f32 to vector<8x1xf32>
      %195 = arith.divf %193, %194 : vector<8x1xf32>
      %196 = vector.broadcast %195 : vector<8x1xf32> to vector<8x32xf32>
      %197 = arith.subf %184, %196 : vector<8x32xf32>
      %198 = arith.mulf %197, %197 : vector<8x32xf32>
      %cst_110 = arith.constant dense<0.000000e+00> : vector<8xf32>
      %199 = vector.multi_reduction <add>, %198, %cst_110 [1] : vector<8x32xf32> to vector<8xf32>
      %200 = vector.shape_cast %199 : vector<8xf32> to vector<8x1xf32>
      %cst_111 = arith.constant 3.200000e+01 : f32
      %201 = vector.broadcast %cst_111 : f32 to vector<8x1xf32>
      %202 = arith.divf %200, %201 : vector<8x1xf32>
      %203 = vector.broadcast %195 : vector<8x1xf32> to vector<8x32xf32>
      %204 = arith.subf %184, %203 : vector<8x32xf32>
      %cst_112 = arith.constant 9.99999974E-6 : f32
      %205 = vector.broadcast %cst_112 : f32 to vector<8x1xf32>
      %206 = arith.addf %202, %205 : vector<8x1xf32>
      %207 = math.rsqrt %206 : vector<8x1xf32>
      %208 = vector.broadcast %207 : vector<8x1xf32> to vector<8x32xf32>
      %209 = arith.mulf %204, %208 : vector<8x32xf32>
      %210 = vector.broadcast %190 : vector<1x32xf32> to vector<8x32xf32>
      %211 = arith.mulf %209, %210 : vector<8x32xf32>
      %212 = vector.broadcast %191 : vector<1x32xf32> to vector<8x32xf32>
      %213 = arith.addf %211, %212 : vector<8x32xf32>
      %214 = vector.shape_cast %213 : vector<8x32xf32> to vector<1x8x32xf32>
      %c0_113 = arith.constant 0 : index
      %c0_114 = arith.constant 0 : index
      %c0_115 = arith.constant 0 : index
      %215 = vector.load %arg22[%c0_113, %c0_114, %c0_115] : memref<1x8x32xf32, #tpu.memory_space<vmem>>, vector<1x8x32xf32>
      tpu.vector_store %arg22[%c0_113, %c0_114, %c0_115], %214 {strides = array<i32>} : memref<1x8x32xf32, #tpu.memory_space<vmem>>, vector<1x8x32xf32>,
    } else {
    }
    return
  }
  func.func @transform_0(%arg0: i32, %arg1: i32) -> (i32, i32, i32) {
    %c0_i32 = arith.constant 0 : i32
    %c0_i32_0 = arith.constant 0 : i32
    %c0_i32_1 = arith.constant 0 : i32
    return %arg0, %c0_i32, %c0_i32_0 : i32, i32, i32
  }
  func.func @transform_1(%arg0: i32, %arg1: i32) -> (i32, i32, i32) {
    %c0_i32 = arith.constant 0 : i32
    %c0_i32_0 = arith.constant 0 : i32
    %c0_i32_1 = arith.constant 0 : i32
    return %arg0, %c0_i32, %c0_i32_0 : i32, i32, i32
  }
  func.func @transform_2(%arg0: i32, %arg1: i32) -> (i32, i32, i32) {
    %c0_i32 = arith.constant 0 : i32
    %c0_i32_0 = arith.constant 0 : i32
    %c0_i32_1 = arith.constant 0 : i32
    return %arg1, %c0_i32, %c0_i32_0 : i32, i32, i32
  }
  func.func @transform_3(%arg0: i32, %arg1: i32) -> (i32, i32, i32) {
    %c0_i32 = arith.constant 0 : i32
    %c0_i32_0 = arith.constant 0 : i32
    %c0_i32_1 = arith.constant 0 : i32
    return %arg1, %c0_i32, %c0_i32_0 : i32, i32, i32
  }
  func.func @transform_4(%arg0: i32, %arg1: i32) -> (i32, i32, i32) {
    %c0_i32 = arith.constant 0 : i32
    %c0_i32_0 = arith.constant 0 : i32
    %c0_i32_1 = arith.constant 0 : i32
    return %arg1, %c0_i32, %c0_i32_0 : i32, i32, i32
  }
  func.func @transform_5(%arg0: i32, %arg1: i32) -> (i32, i32, i32) {
    %c0_i32 = arith.constant 0 : i32
    %c0_i32_0 = arith.constant 0 : i32
    %c0_i32_1 = arith.constant 0 : i32
    return %arg1, %c0_i32, %c0_i32_0 : i32, i32, i32
  }
  func.func @transform_6(%arg0: i32, %arg1: i32) -> (i32, i32, i32) {
    %c0_i32 = arith.constant 0 : i32
    %c0_i32_0 = arith.constant 0 : i32
    %c0_i32_1 = arith.constant 0 : i32
    return %arg1, %c0_i32, %c0_i32_0 : i32, i32, i32
  }
  func.func @transform_7(%arg0: i32, %arg1: i32) -> (i32, i32, i32) {
    %c0_i32 = arith.constant 0 : i32
    %c0_i32_0 = arith.constant 0 : i32
    %c0_i32_1 = arith.constant 0 : i32
    return %arg1, %c0_i32, %c0_i32_0 : i32, i32, i32
  }
  func.func @transform_8(%arg0: i32, %arg1: i32) -> (i32, i32, i32) {
    %c0_i32 = arith.constant 0 : i32
    %c0_i32_0 = arith.constant 0 : i32
    %c0_i32_1 = arith.constant 0 : i32
    return %arg1, %c0_i32, %c0_i32_0 : i32, i32, i32
  }
  func.func @transform_9(%arg0: i32, %arg1: i32) -> (i32, i32, i32) {
    %c0_i32 = arith.constant 0 : i32
    %c0_i32_0 = arith.constant 0 : i32
    %c0_i32_1 = arith.constant 0 : i32
    return %arg1, %c0_i32, %c0_i32_0 : i32, i32, i32
  }
  func.func @transform_10(%arg0: i32, %arg1: i32) -> (i32, i32, i32) {
    %c0_i32 = arith.constant 0 : i32
    %c0_i32_0 = arith.constant 0 : i32
    %c0_i32_1 = arith.constant 0 : i32
    return %arg1, %c0_i32, %c0_i32_0 : i32, i32, i32
  }
  func.func @transform_11(%arg0: i32, %arg1: i32) -> (i32, i32, i32) {
    %c0_i32 = arith.constant 0 : i32
    %c0_i32_0 = arith.constant 0 : i32
    %c0_i32_1 = arith.constant 0 : i32
    return %arg1, %c0_i32, %c0_i32_0 : i32, i32, i32
  }
  func.func @transform_12(%arg0: i32, %arg1: i32) -> (i32, i32, i32) {
    %c0_i32 = arith.constant 0 : i32
    %c0_i32_0 = arith.constant 0 : i32
    %c0_i32_1 = arith.constant 0 : i32
    return %arg1, %c0_i32, %c0_i32_0 : i32, i32, i32
  }
  func.func @transform_13(%arg0: i32, %arg1: i32) -> (i32, i32, i32) {
    %c0_i32 = arith.constant 0 : i32
    %c0_i32_0 = arith.constant 0 : i32
    %c0_i32_1 = arith.constant 0 : i32
    return %arg1, %c0_i32, %c0_i32_0 : i32, i32, i32
  }
  func.func @transform_14(%arg0: i32, %arg1: i32) -> (i32, i32, i32) {
    %c0_i32 = arith.constant 0 : i32
    %c0_i32_0 = arith.constant 0 : i32
    %c0_i32_1 = arith.constant 0 : i32
    return %arg1, %c0_i32, %c0_i32_0 : i32, i32, i32
  }
  func.func @transform_15(%arg0: i32, %arg1: i32) -> (i32, i32, i32) {
    %c0_i32 = arith.constant 0 : i32
    %c0_i32_0 = arith.constant 0 : i32
    %c0_i32_1 = arith.constant 0 : i32
    return %arg1, %c0_i32, %c0_i32_0 : i32, i32, i32
  }
  func.func @transform_16(%arg0: i32, %arg1: i32) -> (i32, i32, i32) {
    %c0_i32 = arith.constant 0 : i32
    %c0_i32_0 = arith.constant 0 : i32
    %c0_i32_1 = arith.constant 0 : i32
    return %arg1, %c0_i32, %c0_i32_0 : i32, i32, i32
  }
  func.func @transform_17(%arg0: i32, %arg1: i32) -> (i32, i32, i32) {
    %c0_i32 = arith.constant 0 : i32
    %c0_i32_0 = arith.constant 0 : i32
    %c0_i32_1 = arith.constant 0 : i32
    return %arg1, %c0_i32, %c0_i32_0 : i32, i32, i32
  }
  func.func @transform_18(%arg0: i32, %arg1: i32) -> (i32, i32) {
    %c0_i32 = arith.constant 0 : i32
    %c0_i32_0 = arith.constant 0 : i32
    %c0_i32_1 = arith.constant 0 : i32
    return %c0_i32, %c0_i32_0 : i32, i32
  }
  func.func @transform_19(%arg0: i32, %arg1: i32) -> (i32, i32) {
    %c0_i32 = arith.constant 0 : i32
    %c0_i32_0 = arith.constant 0 : i32
    %c0_i32_1 = arith.constant 0 : i32
    return %c0_i32, %c0_i32_0 : i32, i32
  }
  func.func @transform_20(%arg0: i32, %arg1: i32) -> (i32, i32, i32) {
    %c0_i32 = arith.constant 0 : i32
    %c0_i32_0 = arith.constant 0 : i32
    %c0_i32_1 = arith.constant 0 : i32
    return %arg0, %c0_i32, %c0_i32_0 : i32, i32, i32
  }
}

</mosaic_0001>

<bundles_post_ra>
// kernel: tpu_custom_call.1
= control target key start
LH: loop header
LB: loop body
LE: loop exit
PB: predicated region body
PF: predicated region fallthrough
CT: control target
= control target key end

     0   :  { %s3177_s0 = inlined_call_operand.hbm [shape: f32[2,8,32], index: 0, kind: input, shape index: {}]   ;;  %s3178_s1 = inlined_call_operand.hbm [shape: f32[2,1,8], index: 1, kind: input, shape index: {}]   ;;  %s3179_s2 = inlined_call_operand.hbm [shape: f32[2,1,32], index: 2, kind: input, shape index: {}]   ;;  %s3180_s3 = inlined_call_operand.vmem [shape: f32[2,1,32], index: 3, kind: input, shape index: {}]   ;;  %s3181_s4 = inlined_call_operand.vmem [shape: f32[2,32,32], index: 4, kind: input, shape index: {}]   ;;  %s3182_s5 = inlined_call_operand.hbm [shape: f32[2,1,32], index: 5, kind: input, shape index: {}]   ;;  %s3183_s6 = inlined_call_operand.vmem [shape: f32[2,32,32], index: 6, kind: input, shape index: {}]   ;;  %s3184_s7 = inlined_call_operand.vmem [shape: f32[2,1,32], index: 7, kind: input, shape index: {}]   ;;  %s3185_s8 = inlined_call_operand.vmem [shape: f32[2,32,32], index: 8, kind: input, shape index: {}]   ;;  %s3186_s9 = inlined_call_operand.vmem [shape: f32[2,1,32], index: 9, kind: input, shape index: {}]   ;;  %s3187_s10 = inlined_call_operand.hbm [shape: f32[2,32,32], index: 10, kind: input, shape index: {}]   ;;  %s3188_s11 = inlined_call_operand.vmem [shape: f32[2,1,32], index: 11, kind: input, shape index: {}]   ;;  %s3189_s12 = inlined_call_operand.vmem [shape: f32[2,1,32], index: 12, kind: input, shape index: {}]   ;;  %s3190_s13 = inlined_call_operand.hbm [shape: f32[2,1,32], index: 13, kind: input, shape index: {}]   ;;  %s3191_s14 = inlined_call_operand.hbm [shape: f32[2,32,64], index: 14, kind: input, shape index: {}]   ;;  %s3192_s15 = inlined_call_operand.vmem [shape: f32[2,1,64], index: 15, kind: input, shape index: {}]   ;;  %s3193_s16 = inlined_call_operand.vmem [shape: f32[2,64,32], index: 16, kind: input, shape index: {}]   ;;  %s3194_s17 = inlined_call_operand.vmem [shape: f32[2,1,32], index: 17, kind: input, shape index: {}]   ;;  %s3195_s18 = inlined_call_operand.vmem [shape: f32[1,32], index: 18, kind: input, shape index: {}]   ;;  %s3196_s19 = inlined_call_operand.vmem [shape: f32[1,32], index: 19, kind: input, shape index: {}]   ;;  %s3197_s20 = inlined_call_operand.hbm [shape: f32[2,8,32], index: 20, kind: output, shape index: {}]  }
   0x1   :  { %3218 = sst [smem:[#allocation38_spill]] %s3177_s0 }
   0x2   :  { %3219 = sst [smem:[#allocation39_spill]] %s3178_s1 }
   0x3   :  { %3220 = sst [smem:[#allocation40_spill]] %s3179_s2 }
   0x4   :  { %3221 = sst [smem:[#allocation41_spill]] %s3180_s3 }
   0x5   :  { %3222 = sst [smem:[#allocation42_spill]] %s3181_s4 }
   0x6   :  { %3223 = sst [smem:[#allocation43_spill]] %s3182_s5 }
   0x7   :  { %3224 = sst [smem:[#allocation44_spill]] %s3183_s6 }
   0x8   :  { %3225 = sst [smem:[#allocation45_spill]] %s3184_s7 }
   0x9   :  { %3226 = sst [smem:[#allocation46_spill]] %s3185_s8 }
   0xa   :  { %3227 = sst [smem:[#allocation47_spill]] %s3186_s9 }
   0xb   :  { %3228 = sst [smem:[#allocation48_spill]] %s3187_s10 }
   0xc   :  { %3229 = sst [smem:[#allocation49_spill]] %s3188_s11 }
   0xd   :  { %3230 = sst [smem:[#allocation50_spill]] %s3189_s12 }
   0xe   :  { %3231 = sst [smem:[#allocation51_spill]] %s3190_s13 }
   0xf   :  { %3232 = sst [smem:[#allocation52_spill]] %s3191_s14 }
  0x10   :  { %3233 = sst [smem:[#allocation53_spill]] %s3192_s15 }
  0x11   :  { %3234 = sst [smem:[#allocation54_spill]] %s3193_s16 }
  0x12   :  { %3235 = sst [smem:[#allocation55_spill]] %s3194_s17 }
  0x13   :  { %3236 = sst [smem:[#allocation56_spill]] %s3195_s18 }
  0x14   :  { %3237 = sst [smem:[#allocation57_spill]] %s3196_s19 }
  0x15   :  { %3238 = sst [smem:[#allocation58_spill]] %s3197_s20 }
  0x16   :  { %25 = vsyncpa [#allocation4], 0 }
  0x17   :  { %27 = vsyncpa [#allocation4 + $0x1], 0 }
  0x18   :  { %28 = vsyncpa [#allocation7], 0 }
  0x19   :  { %30 = vsyncpa [#allocation7 + $0x1], 0 }
  0x1a   :  { %31 = vsyncpa [#allocation10], 0 }
  0x1b   :  { %33 = vsyncpa [#allocation10 + $0x1], 0 }
  0x1c   :  { %34 = vsyncpa [#allocation13], 0 }
  0x1d   :  { %36 = vsyncpa [#allocation13 + $0x1], 0 }
  0x1e   :  { %37 = vsyncpa [#allocation5], 0 }
  0x1f   :  { %39 = vsyncpa [#allocation5 + $0x1], 0  ;;  %s2659_s1 = smov 0   ;;  %s2661_s22 = smov 0  }
  0x20   :  { %s2663_s23 = smov 0   ;;  %s2665_s24 = smov 0  }
  0x21   :  { %s2667_s2 = smov 0   ;;  %s2669_s25 = smov 0  }
  0x22   :  { %s2671_s3 = smov 0   ;;  %s2673_s26 = smov 0  }
  0x23   :  { %s2675_s27 = smov 0   ;;  %s2677_s28 = smov 0  }
  0x24   :  { %s2679_s4 = smov 0  }
  0x25 LB: > { %3239 = sst [smem:[#allocation22_spill]] %s2507_s22  ;;  %s2713_s29 = sadd.s32 4294967295, %s2543_s4   ;;  %s2543_s4 = sphi %s2679_s4, %s45_s4   ;;  %s2539_s28 = sphi %s2677_s28, %s3323_s28   ;;  %s2535_s27 = sphi %s2675_s27, %s3322_s27   ;;  %s2531_s26 = sphi %s2673_s26, %s3321_s26   ;;  %s2527_s3 = sphi %s2671_s3, %s3320_s3   ;;  %s2523_s25 = sphi %s2669_s25, %s3319_s25   ;;  %s2519_s2 = sphi %s2667_s2, %s3318_s2   ;;  %s2515_s24 = sphi %s2665_s24, %s3317_s24   ;;  %s2511_s23 = sphi %s2663_s23, %s3316_s23   ;;  %s2507_s22 = sphi %s2661_s22, %s3315_s22   ;;  %s2503_s1 = sphi %s2659_s1, %s3314_s1  }
  0x26   : > { %3240 = sst [smem:[#allocation23_spill]] %s2511_s23  ;;  %s1963_s30 = sadd.s32 4294967294, %s2543_s4  }
  0x27   : > { %3241 = sst [smem:[#allocation24_spill]] %s2515_s24  ;;  %p71_p0 = scmp.ne.s32.totalorder %s2523_s25, %s2519_s2 }
  0x28   : > { %3242 = sst [smem:[#allocation25_spill]] %s2519_s2  ;;  %p72_p1 = scmp.eq.s32.totalorder %s2543_s4, 0 }
  0x29   : > { %3243 = sst [smem:[#allocation26_spill]] %s2523_s25  ;;  %p77_p2 = scmp.ne.s32.totalorder %s2519_s2, %s2515_s24 }
  0x2a   : > { %3244 = sst [smem:[#allocation27_spill]] %s2531_s26  ;;  %p78_p3 = scmp.eq.s32.totalorder %s2713_s29, 0 }
  0x2b   : > { %3245 = sst [smem:[#allocation28_spill]] %s2535_s27  ;;  %p2727_p4 = por %p72_p1, %p71_p0 }
  0x2c   : > { %3246 = sst [smem:[#allocation29_spill]] %s2539_s28  ;;  %p2732_p5 = por %p78_p3, %p77_p2 }
  0x2d   : > { %3247 = sst [smem:[#allocation30_spill]] %s2543_s4  ;;  %p123_p6 = scmp.ne.s32.totalorder %s2511_s23, %s2507_s22 }
  0x2e   : > { %p129_p7 = scmp.ne.s32.totalorder %s2507_s22, %s2503_s1  ;;  %p585_p8 = scmp.eq.s32.totalorder %s2713_s29, 3 }
  0x2f   : > { %p2740_p9 = por %p123_p6, %p72_p1  ;;  %p591_p10 = scmp.eq.s32.totalorder %s1963_s30, 3 }
  0x30   : > { %p2744_p11 = por %p129_p7, %p78_p3  ;;  %p2751_p12 = por %p585_p8, %p71_p0 }
  0x31   : > { %p2755_p13 = por %p591_p10, %p77_p2  ;;  %p2059_p1 = scmp.lt.s32.totalorder %s2543_s4, 4 }
  0x32   : > { %s3252_s26 = scalar_select %p2751_p12, 1, 0 }
  0x33   : > { %s3254_s1 = scalar_select %p2755_p13, 1, 0 }
  0x34   : > { %3253 = sst [smem:[#allocation31_spill]] %s3252_s26  ;;  %s2761_s24 = sand.u32 1, %s2523_s25  }
  0x35   : > { %3255 = sst [smem:[#allocation32_spill]] %s3254_s1  ;;  %s2764_s30 = sand.u32 1, %s2543_s4  }
  0x36   : > { %p2768_p0 = pnand %p2059_p1, %p2727_p4  ;;  %s3257_s17 = sld [smem:[#allocation39_spill]] }
  0x37   : > { %s639_s15 = scalar_lea.vmem [#allocation6], %s2761_s24  ;;  %s3203_s20 = scalar_lea.sflag [#allocation7], %s2764_s30 }
  0x38   : > { %s646_s12 = sshll.u32 %s639_s15, 4  ;;  %p2784_p2 = pnand %p2059_p1, %p2740_p9  ;;  %s647_s12 = int_to_ptr.vmem [resolvable:$true] %s646_s12 }
  0x39   : > { %p1974_p3 = scmp.ge.s32.totalorder %s2543_s4, 1  ;;  %p820_p4 = scmp.lt.s32.totalorder %s2543_s4, 5 }
  0x3a   : > { %s54_s16 = sadd.s32 1, %s2535_s27  ;;  %s3262_s5 = sld [smem:[#allocation43_spill]] }
  0x3b   : > { %p2790_p6 = pnand %p1974_p3, %p820_p4  ;;  %p55_p7 = scmp.ge.s32.totalorder %s54_s16, 2 }
  0x3c   : > { %s642_s1 = scalar_lea.hbm %s3257_s17, %s2539_s28  ;;  %s2796_s17 = sand.u32 1, %s2511_s23  }
  0x3d   : > { %s644_s11 = sshll.u32 %s642_s1, 4  ;;  %s3325_s16 = smov (%p55_p7, %s54_s16), 0  ;;  %s645_s11 = int_to_ptr.hbm [resolvable:$true] %s644_s11 }
  0x3e   : > { %2039 = dma.hbm_to_vmem [thread:$0]  (!%p2768_p0), %s645_s11, 16, %s647_s12, %s3203_s20  }
  0x3f   : > { %3260 = sst [smem:[#allocation33_spill]] %s3325_s16  ;;  %s3261_s11 = sadd.s32 1, %s2539_s28 }
  0x40   : > { %s3327_s11 = smov (!%p55_p7, %s3261_s11), %s2539_s28  ;;  %s113_s12 = ssub.s32 %s2535_s27, %s3325_s16 }
  0x41   : > { %s690_s1 = scalar_lea.hbm %s3262_s5, %s2535_s27  ;;  %p59_p8 = scmp.ge.s32.totalorder %s3327_s11, 2 }
  0x42   : > { %p114_p9 = scmp.eq.s32.totalorder %s113_s12, 0  ;;  %s692_s20 = sshll.u32 %s690_s1, 4  ;;  %s693_s20 = int_to_ptr.hbm [resolvable:$true] %s692_s20 }
  0x43   : > { %s687_s4 = scalar_lea.vmem [#allocation9], %s2796_s17  ;;  %s3329_s11 = smov (%p59_p8, %s3327_s11), 0 }
  0x44   : > { %s694_s8 = sshll.u32 %s687_s4, 4  ;;  %3263 = sst [smem:[#allocation34_spill]] %s3329_s11  ;;  %s695_s8 = int_to_ptr.vmem [resolvable:$true] %s694_s8 }
  0x45   : > { %s3264_s7 = sadd.s32 1, %s2511_s23  ;;  %s61_s16 = ssub.s32 %s2539_s28, %s3329_s11 }
  0x46   : > { %s2815_s6 = scalar_select %p114_p9, %s2511_s23, %s3264_s7  }
  0x47   : > { %p62_p10 = scmp.eq.s32.totalorder %s61_s16, 0  ;;  %s3209_s12 = scalar_lea.sflag [#allocation10], %s2764_s30 }
  0x48   : > { %3265 = sst [smem:[#allocation35_spill]] %s2815_s6  ;;  %s3266_s4 = sadd.s32 1, %s2523_s25 }
  0x49   : > { %2045 = dma.hbm_to_vmem [thread:$0]  (!%p2784_p2), %s693_s20, 16, %s695_s8, %s3209_s12  }
  0x4a   : > { %s2827_s26 = scalar_select %p62_p10, %s2523_s25, %s3266_s4  }
  0x4b   : > { %s3268_s13 = sld [smem:[#allocation51_spill]]  ;;  %s766_s11 = scalar_lea.vmem [#allocation12], %s2796_s17 }
  0x4c   : > { %3267 = sst [smem:[#allocation36_spill]] %s2827_s26  ;;  %s773_s23 = sshll.u32 %s766_s11, 4  ;;  %s774_s23 = int_to_ptr.vmem [resolvable:$true] %s773_s23 }
  0x4d   : > { %s3210_s16 = scalar_lea.sflag [#allocation13], %s2764_s30  ;;  %s1966_s8 = sshll.u32 %s2761_s24, 3 }
  0x4e   : > { %s1967_s20 = sshll.u32 %s2539_s28, 3  ;;  %s3269_s1 = sld [smem:[#allocation38_spill]] }
  0x4f   : > { %s621_s12 = scalar_lea.vmem [#allocation3], %s1966_s8  ;;  %s656_s28 = scalar_lea.vmem [#allocation8], %s2796_s17 }
  0x50   : > { %s629_s21 = sshll.u32 %s621_s12, 4  ;;  %s663_s25 = sshll.u32 %s656_s28, 4  ;;  %s630_s21 = int_to_ptr.vmem [resolvable:$true] %s629_s21  ;;  %s664_s25 = int_to_ptr.vmem [resolvable:$true] %s663_s25 }
  0x51   : > { %s769_s7 = scalar_lea.hbm %s3268_s13, %s2535_s27  ;;  %s618_s13 = scalar_lea.sflag [#allocation4], %s2761_s24 }
  0x52   : > { %s771_s6 = sshll.u32 %s769_s7, 4  ;;  %s3271_s12 = scalar_lea.sflag [#allocation7], %s2764_s30  ;;  %s772_s6 = int_to_ptr.hbm [resolvable:$true] %s771_s6 }
  0x53   : > { %2051 = dma.hbm_to_vmem [thread:$0]  (!%p2784_p2), %s772_s6, 16, %s774_s23, %s3210_s16  }
  0x54   : > { %s625_s7 = scalar_lea.hbm %s3269_s1, %s1967_s20  ;;  %s3270_s23 = sld [smem:[#allocation40_spill]] }
  0x55   : > { %s627_s11 = sshll.u32 %s625_s7, 4  ;;  %s2011_s8 = sshll.u32 %s2535_s27, 5  ;;  %s628_s11 = int_to_ptr.hbm [resolvable:$true] %s627_s11 }
  0x56   : > { %2036 = dma.hbm_to_vmem [thread:$0]  (!%p2768_p0), %s628_s11, 128, %s630_s21, %s618_s13  }
  0x57   : > { %s3272_s20 = sshll.u32 %s2796_s17, 5  ;;  %s3273_s10 = sld [smem:[#allocation48_spill]] }
  0x58   : > { %s733_s13 = scalar_lea.vmem [#allocation11], %s3272_s20  ;;  %s2545_s28 = smov 128  }
  0x59   : > { %s741_s18 = sshll.u32 %s733_s13, 4  ;;  %s3274_s1 = scalar_lea.sflag [#allocation10], %s2764_s30  ;;  %s742_s18 = int_to_ptr.vmem [resolvable:$true] %s741_s18 }
  0x5a   : > { %s659_s16 = scalar_lea.hbm %s3270_s23, %s2535_s27  ;;  %s3275_s14 = sld [smem:[#allocation52_spill]] }
  0x5b   : > { %s661_s4 = sshll.u32 %s659_s16, 4  ;;  %s2546_s16 = smov 8   ;;  %s662_s4 = int_to_ptr.hbm [resolvable:$true] %s661_s4 }
  0x5c   : > { %2042 = dma.hbm_to_vmem [thread:$0]  (!%p2784_p2), %s662_s4, 16, %s664_s25, %s3271_s12  }
  0x5d   : > { %s738_s21 = scalar_lea.hbm %s3273_s10, %s2011_s8  ;;  %s3276_s23 = smov %s3272_s20 }
  0x5e   : > { %s739_s5 = sshll.u32 %s738_s21, 4  ;;  %s784_s4 = scalar_lea.vmem [#allocation14], %s3276_s23  ;;  %s740_s5 = int_to_ptr.hbm [resolvable:$true] %s739_s5 }
  0x5f   : > { %2048 = dma.hbm_to_vmem [thread:$0]  (!%p2784_p2), %s740_s5, 512, %s742_s18, %s3274_s1, %s2545_s28, %s2545_s28, %s2546_s16  }
  0x60   : > { %s789_s11 = scalar_lea.hbm %s3275_s14, %s2011_s8  ;;  %s792_s12 = sshll.u32 %s784_s4, 4  ;;  %s793_s12 = int_to_ptr.vmem [resolvable:$true] %s792_s12 }
  0x61   : > { %s790_s6 = sshll.u32 %s789_s11, 4  ;;  %s3277_s20 = scalar_lea.sflag [#allocation13], %s2764_s30  ;;  %s791_s6 = int_to_ptr.hbm [resolvable:$true] %s790_s6 }
  0x62   : > { %2054 = dma.hbm_to_vmem [thread:$0]  (!%p2784_p2), %s791_s6, 512, %s793_s12, %s3277_s20, %s2545_s28, %s2545_s28, %s2546_s16  }
  0x63   : > { %824 = sbr.rel (%p2790_p6) target bundleno = 2290 (0x8f2), region = 100 }
  0x68   : > { %s2879_s13 = sand.u32 1, %s2519_s2  }
  0x69   : > { %s3213_s8 = sshll.u32 %s2879_s13, 3  ;;  %s827_s18 = scalar_lea.sflag [#allocation4], %s2879_s13 }
  0x6a   : > { %s2885_s17 = scalar_lea.vmem [#allocation3], %s3213_s8 }
  0x6b   : > { %2478 = dma.done.wait (%p2732_p5), %s827_s18, 128  }
  0x6c   : > { %2480 = vsyncadd (%p2732_p5), %s827_s18, 4294967168  ;;  %s836_s9 = sand.u32 1, %s2713_s29  }
  0x6d   : > { %s837_s30 = scalar_lea.sflag [#allocation7], %s836_s9 }
  0x6e   : > { %2482 = dma.done.wait (%p2732_p5), %s837_s30, 16  }
  0x6f   : > { %2484 = vsyncadd (%p2732_p5), %s837_s30, 4294967280  ;;  %s2898_s24 = sand.u32 1, %s2507_s22  }
  0x70   : > { %2486 = dma.done.wait (%p2744_p11), %s837_s30, 16  }
  0x71   : > { %2488 = vsyncadd (%p2744_p11), %s837_s30, 4294967280  ;;  %s855_s29 = scalar_lea.sflag [#allocation10], %s836_s9 }
  0x72   : > { %2490 = dma.done.wait (%p2744_p11), %s855_s29, 528  }
  0x73   : > { %2492 = vsyncadd (%p2744_p11), %s855_s29, 4294966768  ;;  %s1976_s19 = sshll.u32 %s2898_s24, 5  ;;  %s874_s28 = scalar_lea.sflag [#allocation13], %s836_s9 }
  0x74   : > { %s2911_s5 = scalar_lea.vmem [#allocation11], %s1976_s19 }
  0x75   : > { %3278 = sst [smem:[#allocation37_spill]] %s2911_s5 }
  0x76   : > { %2494 = dma.done.wait (%p2744_p11), %s874_s28, 528  }
  0x77   : > { %2496 = vsyncadd (%p2744_p11), %s874_s28, 4294966768  ;;  %p1011_p5 = scmp.lt.s32.totalorder %s2527_s3, 1  ;;  %s3280_s12 = sld [smem:[#allocation42_spill]] }
  0x78   : > { %s3281_s30 = sld [smem:[#allocation44_spill]]  ;;  %s2972_s4 = scalar_lea.vmem [#allocation14], %s1976_s19 }
  0x79   : > { %s2920_s1 = scalar_select %p1011_p5, %s2527_s3, 1 }
  0x7a   : > { %s3283_s26 = sld [smem:[#allocation46_spill]]  ;;  %p1987_p11 = scmp.ne.s32.totalorder %s2527_s3, 0 }
  0x7b   : > { %s2013_s6 = sshll.u32 %s2920_s1, 5  ;;  %s3284_s10 = sld [smem:[#allocation47_spill]] }
  0x7c   : > { %s3285_s14 = sld [smem:[#allocation49_spill]]  ;;  %s2016_s16 = sshll.u32 %s2920_s1, 6 }
  0x7d   : > { %s2930_s20 = scalar_lea.vmem %s3280_s12, %s2013_s6  ;;  %s3287_s7 = sld [smem:[#allocation53_spill]] }
  0x7e   : > { %s2935_s29 = scalar_lea.vmem %s3281_s30, %s2013_s6  ;;  %s3286_s30 = sld [smem:[#allocation50_spill]] }
  0x7f   : > { %s3288_s21 = sld [smem:[#allocation55_spill]] }
  0x80   : > { %s2944_s8 = scalar_lea.vmem %s3283_s26, %s2013_s6 }
  0x81   : > { %s1034_s23 = scalar_lea.vmem %s3284_s10, %s2920_s1  ;;  %s3289_s10 = sld [smem:[#allocation54_spill]] }
  0x82   : > { %s1037_s27 = scalar_lea.vmem %s3285_s14, %s2920_s1  ;;  %s3290_s14 = sshll.u32 %s2879_s13, 3 }
  0x83   : > { %s1043_s25 = scalar_lea.vmem %s3287_s7, %s2920_s1  ;;  %s2976_s12 = scalar_lea.vmem [#allocation15], %s3290_s14 }
  0x84   : > { %s1040_s2 = scalar_lea.vmem %s3286_s30, %s2920_s1  ;;  %1055 = sbr.rel (%p1987_p11) target bundleno = 139 (0x8b), region = 132 }
  0x85   : > { %s1051_s6 = scalar_lea.vmem %s3288_s21, %s2920_s1 }
  0x87   : > { %s2970_s11 = scalar_lea.vmem %s3289_s10, %s2016_s16 }
  0x89   : > { %v1056_v0 = vld [vmem:[%s2885_s17] sm:$0xff]  ;;  %vm1057_vm0 = vcmask 261120  }
  0x8a   : > { %1058 = vst.msk [vmem:[%s2976_s12] sm:$0xff] %vm1057_vm0, %v1056_v0 }
  0x8b PF: > { %vm1063_vm1 = vcmask 261120   ;;  %v2547_v3 = vmov 32.0   ;;  %v1104_v15 = vld [vmem:[%s2930_s20 + $0x18] sm:$0xff]  ;;  %v1103_v17 = vld [vmem:[%s2930_s20 + $0x10] sm:$0xff]  ;;  %v1102_v19 = vld [vmem:[%s2930_s20 + $0x8] sm:$0xff]  ;;  %s3291_s22 = scalar_lea.vmem [#allocation8], %s2898_s24 }
  0x8c   : > { %2169 = vrcp.f32 %v2547_v3  ;;  %v1164_v16 = vld [vmem:[%s2944_s8 + $0x18] sm:$0xff]  ;;  %1124 = vmatpush.msra.mxu1 %v1104_v15  ;;  %v1163_v18 = vld [vmem:[%s2944_s8 + $0x10] sm:$0xff]  ;;  %v1162_v20 = vld [vmem:[%s2944_s8 + $0x8] sm:$0xff]  ;;  %s3292_s19 = sld [smem:[#allocation41_spill]]  ;;  %s3294_s16 = scalar_lea.vmem [#allocation9], %s2898_s24  ;;  %vm1192_vm6 = vcmask 64512  }
  0x8d   : > { %1181 = vmatpush.msra.mxu2 %v1164_v16  ;;  %v1101_v21 = vld [vmem:[%s2930_s20] sm:$0xff]  ;;  %v1136_v23 = vld [vmem:[%s2935_s29 + $0x18] sm:$0xff]  ;;  %v1135_v24 = vld [vmem:[%s2935_s29 + $0x10] sm:$0xff]  ;;  %s3295_s18 = sld [smem:[#allocation45_spill]]  ;;  %s2548_s15 = smov 104   ;;  %vm1324_vm7 = vcmask 130112  }
  0x8e   : > { %1125 = vmatpush.msra.mxu1 %v1103_v17  ;;  %v1161_v22 = vld [vmem:[%s2944_s8] sm:$0xff]  ;;  %v1134_v25 = vld [vmem:[%s2935_s29 + $0x8] sm:$0xff]  ;;  %s2549_s26 = smov 120   ;;  %s2550_s21 = smov 112   ;;  %vm1395_vm8 = vcmask 195712   ;;  %vm1466_vm9 = vcmask 261312  }
  0x8f   : > { %1182 = vmatpush.msra.mxu2 %v1163_v18  ;;  %v1133_v28 = vld [vmem:[%s2935_s29] sm:$0xff]  ;;  %s3299_s0 = sld [smem:[#allocation37_spill]]  ;;  %s2551_s10 = smov 8   ;;  %vm1573_vm13 = vcmask 523264  }
  0x90   : > { %1126 = vmatpush.msra.mxu1 %v1102_v19  ;;  %v2158_v36 = vld [vmem:[%s3291_s22] ss:$0 sm:$0xff]  ;;  %s2552_s14 = smov 16   ;;  %s2553_s22 = smov 24  }
  0x91   : > { %v2982_v1 = vld [vmem:[%s2976_s12] sm:$0xff]  ;;  %1183 = vmatpush.msra.mxu2 %v1162_v20  ;;  %p2006_p1 = scmp.ne.s32.totalorder %s2527_s3, 1 }
  0x92   : > { %v1064_v2 = vsel %vm1063_vm1, %v2982_v1, 0.0  ;;  %v2170_v4 = vpop.eup %2169  ;;  %1127 = vmatpush.msra.mxu1 %v1101_v21  ;;  %s3293_s5 = scalar_lea.vmem %s3292_s19, %s2920_s1  ;;  %v2160_v43 = vld [vmem:[%s3294_s16] ss:$0 sm:$0xff]  ;;  %s3302_s16 = scalar_lea.vmem [#allocation12], %s2898_s24 }
  0x93   : > { %1065 = vadd.xlane.f32.xlu0 %v1064_v2  ;;  %v1068_v5 = vmul.f32 32.0, %v2170_v4  ;;  %vm1072_vm2 = vweird.f32 %v2170_v4  ;;  %1184 = vmatpush.msra.mxu2 %v1161_v22  ;;  %v2159_v39 = vld [vmem:[%s3293_s5] ss:$0 sm:$0xff]  ;;  %s3296_s9 = scalar_lea.vmem %s3295_s18, %s2920_s1  ;;  %s3306_s30 = sld [smem:[#allocation57_spill]] (!%p2006_p1) }
  0x94   : > { %1153 = vmatpush.msrb.mxu1 %v1136_v23  ;;  %v2162_v44 = vld [vmem:[%s3296_s9] ss:$0 sm:$0xff] }
  0x95   : > { %v1069_v6 = vsub.f32 1.0, %v1068_v5  ;;  %v2161_v45 = vld [vmem:[%s1034_s23] ss:$0 sm:$0xff]  ;;  %s3298_s23 = scalar_lea.vmem [#allocation6], %s2879_s13 }
  0x96   : > { %1154 = vmatpush.msrb.mxu1 %v1135_v24  ;;  %v2163_v58 = vld [vmem:[%s3298_s23] ss:$0 sm:$0xff] }
  0x97   : > { %v1070_v7 = vmul.f32 %v2170_v4, %v1069_v6 }
  0x98   : > { %1155 = vmatpush.msrb.mxu1 %v1134_v25 }
  0x99   : > { %v1071_v8 = vadd.f32 %v2170_v4, %v1070_v7 }
  0x9a   : > { %1156 = vmatpush.msrb.mxu1 %v1133_v28 }
  0x9b   : > { %v2986_v9 = vsel %vm1072_vm2, %v2170_v4, %v1071_v8 }
 0x106   : > { %v1066_v10 = vpop.xlane.xlu0 %1065 }
 0x107   : > { %v1074_v11 = vmul.f32 %v2986_v9, %v1066_v10 }
 0x109   : > { %v1075_v12 = vsub.f32 %v2982_v1, %v1074_v11 }
 0x10b   : > { %v1076_v13 = vmul.f32 %v1075_v12, %v1075_v12 }
 0x10d   : > { %v1077_v14 = vsel %vm1063_vm1, %v1076_v13, 0.0 }
 0x10e   : > { %1078 = vadd.xlane.f32.xlu0 %v1077_v14 }
 0x181   : > { %v1079_v26 = vpop.xlane.xlu0 %1078 }
 0x182   : > { %v1080_v27 = vmul.f32 %v1079_v26, %v2986_v9 }
 0x184   : > { %v1081_v29 = vadd.f32 1e-05, %v1080_v27 }
 0x186   : > { %2171 = vrsqrt.f32 %v1081_v29  ;;  %vm1088_vm4 = vweird.f32 %v1081_v29 }
 0x18c   : > { %v2172_v30 = vpop.eup %2171 }
 0x18d   : > { %v1083_v31 = vmul.f32 %v2172_v30, %v1081_v29  ;;  %vm1089_vm3 = vweird.f32 %v2172_v30 }
 0x18e   : > { %vm1090_vm5 = vmor %vm1088_vm4, %vm1089_vm3 }
 0x18f   : > { %v1084_v32 = vmul.f32 %v2172_v30, %v1083_v31 }
 0x191   : > { %v1085_v33 = vmul.f32 0.5, %v1084_v32 }
 0x193   : > { %v1086_v34 = vsub.f32 1.5, %v1085_v33 }
 0x195   : > { %v1087_v35 = vmul.f32 %v2172_v30, %v1086_v34 }
 0x197   : > { %v1091_v37 = vsel %vm1090_vm5, %v2172_v30, %v1087_v35 }
 0x198   : > { %v1092_v38 = vmul.f32 %v1091_v37, %v1075_v12 }
 0x19a   : > { %v1096_v40 = vmul.f32 %v2158_v36, %v1092_v38 }
 0x19c   : > { %v1100_v41 = vadd.f32 %v2159_v39, %v1096_v40 }
 0x19e   : > { %1988 = vmatmul.msk.f32.vlgmr.msra.gmra.mxu1 %vm1063_vm1, %v1100_v41  ;;  %1990 = vmatmul.msk.f32.vlgmr.msra.gmra.mxu2 %vm1063_vm1, %v1100_v41 }
 0x1a6   : > { %1989 = vmatmul.msk.f32.vlgmr.msrb.gmra.mxu1 %vm1063_vm1, %v1100_v41 }
 0x21b   : > { %v1129_v42 = vpop.f32.mrf.mxu1 }
 0x21c   : > { %v1130_v48 = vadd.f32 %v2160_v43, %v1129_v42 }
 0x21e   : > { %v1132_v51 = vmul.f32 0.35355338, %v1130_v48 }
 0x221   : > { %v1186_v46 = vpop.f32.mrf.mxu2 }
 0x222   : > { %v3026_v50 = vadd.f32 %v2161_v45, %v1186_v46 }
 0x223   : > { %v1158_v47 = vpop.f32.mrf.mxu1 }
 0x224   : > { %v1159_v49 = vadd.f32 %v2162_v44, %v1158_v47 }
 0x226   : > { %1399 = vrot.lane.b32.xlu0 %v1159_v49, %s2548_s15  ;;  %1256 = vrot.lane.b32.xlu2 %v1159_v49, %s2549_s26 }
 0x227   : > { %1328 = vrot.lane.b32.xlu1 %v1159_v49, %s2550_s21  ;;  %1991 = vmatpush.xpose.msk.msra.mxu3 %vm1192_vm6, %v1159_v49 }
 0x22a   : > { %1992 = vmatmul.msk.f32.vlgmr.msra.gmra.mxu3 %vm1192_vm6, %v1132_v51 }
 0x22b   : > { %1248 = vmatpush.msrb.mxu3 %v3026_v50 }
 0x22e   : > { %1254 = vrot.lane.b32.xlu2 %v1132_v51, %s2549_s26 }
 0x22f   : > { %1326 = vrot.lane.b32.xlu1 %v1132_v51, %s2550_s21 }
 0x237   : > { %1397 = vrot.lane.b32.xlu1 %v1132_v51, %s2548_s15  ;;  %v1471_v51 = vld [vmem:[%s3299_s0 + $0x10] sm:$0xff] }
 0x280   : > { %v1257_v52 = vpop.permute.xlu2 %1256 }
 0x281   : > { %1994 = vmatpush.xpose.msk.msra.mxu0 %vm1192_vm6, %v1257_v52  ;;  %v1470_v52 = vld [vmem:[%s3299_s0 + $0x8] sm:$0xff] }
 0x288   : > { %v1255_v53 = vpop.permute.xlu2 %1254 }
 0x289   : > { %1995 = vmatmul.msk.f32.vlgmr.msra.gmra.mxu0 %vm1192_vm6, %v1255_v53  ;;  %v1469_v53 = vld [vmem:[%s3299_s0] sm:$0xff] }
 0x298   : > { %v1400_v54 = vpop.permute.xlu0 %1399 }
 0x299   : > { %v1329_v55 = vpop.permute.xlu1 %1328  ;;  %2000 = vmatpush.xpose.msk.msrb.mxu0 %vm1192_vm6, %v1400_v54 }
 0x29a   : > { %1997 = vmatpush.xpose.msk.msrb.mxu2 %vm1192_vm6, %v1329_v55 }
 0x2a1   : > { %v1327_v56 = vpop.permute.xlu1 %1326 }
 0x2a2   : > { %1998 = vmatmul.msk.f32.vlgmr.msrb.gmra.mxu2 %vm1192_vm6, %v1327_v56  ;;  %v2164_v56 = vld [vmem:[%s1037_s27] ss:$0 sm:$0xff] }
 0x2a9   : > { %v1398_v57 = vpop.permute.xlu1 %1397 }
 0x2aa   : > { %2001 = vmatmul.msk.f32.vlgmr.msrb.gmra.mxu0 %vm1192_vm6, %v1398_v57 }
 0x2ad   : > { %v1216_v59 = vpop.f32.mrf.mxu3 }
 0x2ae   : > { %v1217_v60 = vadd.f32 %v2163_v58, %v1216_v59 }
 0x2b0   : > { %v1219_v61 = vsel %vm1192_vm6, %v1217_v60, -inf }
 0x2b1   : > { %1220 = vmax.xlane.f32.xlu2 %v1219_v61 }
 0x306   : > { %v1279_v62 = vpop.f32.mrf.mxu0 }
 0x307   : > { %v1280_v63 = vadd.f32 %v2163_v58, %v1279_v62 }
 0x309   : > { %v1282_v0 = vsel %vm1192_vm6, %v1280_v63, -inf }
 0x30a   : > { %1283 = vmax.xlane.f32.xlu1 %v1282_v0 }
 0x324   : > { %v1221_v2 = vpop.xlane.xlu2 %1220 }
 0x325   : > { %v1222_v3 = vsub.f32 %v1217_v60, %v1221_v2  ;;  %v1351_v4 = vpop.f32.mrf.mxu2 }
 0x326   : > { %v1352_v5 = vadd.f32 %v2163_v58, %v1351_v4  ;;  %v1535_v4 = vld [vmem:[%s2972_s4 + $0x10] sm:$0xff] }
 0x327   : > { %v1223_v6 = vmul.f32 1.442695, %v1222_v3  ;;  %v1422_v7 = vpop.f32.mrf.mxu0  ;;  %v1536_v3 = vld [vmem:[%s2972_s4 + $0x18] sm:$0xff] }
 0x328   : > { %v1423_v8 = vadd.f32 %v2163_v58, %v1422_v7  ;;  %v1354_v10 = vsel %vm1192_vm6, %v1352_v5, -inf  ;;  %v1544_v7 = vld [vmem:[%s2970_s11 + $0x30] sm:$0xff] }
 0x329   : > { %2173 = vpow2.f32 %v1223_v6  ;;  %1355 = vmax.xlane.f32.xlu0 %v1354_v10  ;;  %v1545_v6 = vld [vmem:[%s2970_s11 + $0x38] sm:$0xff] }
 0x32a   : > { %v1425_v11 = vsel %vm1192_vm6, %v1423_v8, -inf  ;;  %1585 = vmatpush.msra.mxu0 %v1545_v6 }
 0x32b   : > { %1426 = vmax.xlane.f32.xlu2 %v1425_v11 }
 0x32c   : > { %1586 = vmatpush.msra.mxu0 %v1544_v7 }
 0x32f   : > { %v2174_v12 = vpop.eup %2173 }
 0x330   : > { %v1225_v13 = vsel %vm1192_vm6, %v2174_v12, 0.0 }
 0x333   : > { %1226 = vadd.xlane.f32.xlu2 %v1225_v13 }
 0x33d   : > { %1294 = vrot.lane.b32.xlu0 %v3026_v50, %s2549_s26 }
 0x37d   : > { %v1284_v14 = vpop.xlane.xlu1 %1283 }
 0x37e   : > { %v1285_v15 = vsub.f32 %v1280_v63, %v1284_v14  ;;  %v1541_v14 = vld [vmem:[%s2970_s11 + $0x18] sm:$0xff] }
 0x380   : > { %v1286_v16 = vmul.f32 1.442695, %v1285_v15 }
 0x382   : > { %2175 = vpow2.f32 %v1286_v16 }
 0x388   : > { %v2176_v17 = vpop.eup %2175 }
 0x389   : > { %v1288_v18 = vsel %vm1192_vm6, %v2176_v17, 0.0 }
 0x38a   : > { %1289 = vadd.xlane.f32.xlu1 %v1288_v18 }
 0x39c   : > { %v1356_v19 = vpop.xlane.xlu0 %1355 }
 0x39d   : > { %v1357_v20 = vsub.f32 %v1352_v5, %v1356_v19  ;;  %v1533_v5 = vld [vmem:[%s2972_s4] sm:$0xff] }
 0x39e   : > { %v1427_v21 = vpop.xlane.xlu2 %1426 }
 0x39f   : > { %v1358_v22 = vmul.f32 1.442695, %v1357_v20  ;;  %v1428_v23 = vsub.f32 %v1423_v8, %v1427_v21  ;;  %v1543_v8 = vld [vmem:[%s2970_s11 + $0x28] sm:$0xff]  ;;  %v2165_v21 = vld [vmem:[%s1040_s2] ss:$0 sm:$0xff] }
 0x3a0   : > { %1587 = vmatpush.msra.mxu0 %v1543_v8 }
 0x3a1   : > { %2177 = vpow2.f32 %v1358_v22  ;;  %v1429_v24 = vmul.f32 1.442695, %v1428_v23 }
 0x3a3   : > { %2179 = vpow2.f32 %v1429_v24  ;;  %v2166_v24 = vld [vmem:[%s3302_s16] ss:$0 sm:$0xff] }
 0x3a6   : > { %v1227_v25 = vpop.xlane.xlu2 %1226 }
 0x3a7   : > { %v2178_v26 = vpop.eup %2177  ;;  %2181 = vrcp.f32 %v1227_v25 }
 0x3a8   : > { %v1360_v27 = vsel %vm1192_vm6, %v2178_v26, 0.0 }
 0x3a9   : > { %v2180_v28 = vpop.eup %2179  ;;  %1361 = vadd.xlane.f32.xlu2 %v1360_v27  ;;  %v1540_v27 = vld [vmem:[%s2970_s11 + $0x10] sm:$0xff] }
 0x3aa   : > { %v1431_v29 = vsel %vm1192_vm6, %v2180_v28, 0.0 }
 0x3ab   : > { %1432 = vadd.xlane.f32.xlu1 %v1431_v29  ;;  %v1538_v29 = vld [vmem:[%s2970_s11] sm:$0xff] }
 0x3ad   : > { %v2182_v30 = vpop.eup %2181 }
 0x3ae   : > { %v1229_v31 = vmul.f32 %v2182_v30, %v2174_v12  ;;  %v1542_v12 = vld [vmem:[%s2970_s11 + $0x20] sm:$0xff] }
 0x3af   : > { %v1295_v32 = vpop.permute.xlu0 %1294  ;;  %1588 = vmatpush.msra.mxu0 %v1542_v12  ;;  %v2167_v30 = vld [vmem:[%s1043_s25] ss:$0 sm:$0xff]  ;;  %s3305_s25 = sld [smem:[#allocation56_spill]] (!%p2006_p1) }
 0x3b0   : > { %1993 = vmatmul.msk.f32.vlgmr.msrb.gmra.mxu3 %vm1192_vm6, %v1229_v31  ;;  %1315 = vmatpush.msra.mxu1 %v1295_v32 }
 0x3b1   : > { %1589 = vmatpush.msra.mxu0 %v1541_v14 }
 0x3b3   : > { %1590 = vmatpush.msra.mxu0 %v1540_v27 }
 0x3c1   : > { %1365 = vrot.lane.b32.xlu2 %v3026_v50, %s2550_s21 }
 0x3c4   : > { %1436 = vrot.lane.b32.xlu1 %v3026_v50, %s2548_s15  ;;  %v1472_v50 = vld [vmem:[%s3299_s0 + $0x18] sm:$0xff] }
 0x3c5   : > { %1492 = vmatpush.msra.mxu2 %v1472_v50 }
 0x3c7   : > { %1493 = vmatpush.msra.mxu2 %v1471_v51 }
 0x3c9   : > { %1494 = vmatpush.msra.mxu2 %v1470_v52 }
 0x3cb   : > { %1495 = vmatpush.msra.mxu2 %v1469_v53 }
 0x3fd   : > { %v1290_v33 = vpop.xlane.xlu1 %1289 }
 0x3fe   : > { %2183 = vrcp.f32 %v1290_v33 }
 0x404   : > { %v2184_v34 = vpop.eup %2183 }
 0x405   : > { %v1292_v35 = vmul.f32 %v2184_v34, %v2176_v17  ;;  %v2168_v34 = vld [vmem:[%s1051_s6] ss:$0 sm:$0xff] }
 0x407   : > { %1996 = vmatmul.msk.f32.vlgmr.msra.gmra.mxu1 %vm1192_vm6, %v1292_v35 }
 0x41c   : > { %v1362_v36 = vpop.xlane.xlu2 %1361 }
 0x41d   : > { %2185 = vrcp.f32 %v1362_v36 }
 0x41e   : > { %v1433_v40 = vpop.xlane.xlu1 %1432 }
 0x41f   : > { %2187 = vrcp.f32 %v1433_v40 }
 0x423   : > { %v2186_v37 = vpop.eup %2185 }
 0x424   : > { %v1364_v38 = vmul.f32 %v2186_v37, %v2178_v26  ;;  %v1366_v39 = vpop.permute.xlu2 %1365 }
 0x425   : > { %1386 = vmatpush.msra.mxu3 %v1366_v39  ;;  %v2188_v41 = vpop.eup %2187 }
 0x426   : > { %1999 = vmatmul.msk.f32.vlgmr.msra.gmra.mxu3 %vm1192_vm6, %v1364_v38  ;;  %v1435_v43 = vmul.f32 %v2188_v41, %v2180_v28  ;;  %v1539_v28 = vld [vmem:[%s2970_s11 + $0x8] sm:$0xff] }
 0x427   : > { %1564 = vmatpush.msrb.mxu3 %v1536_v3  ;;  %1591 = vmatpush.msra.mxu0 %v1539_v28 }
 0x429   : > { %1565 = vmatpush.msrb.mxu3 %v1535_v4  ;;  %1592 = vmatpush.msra.mxu0 %v1538_v29 }
 0x433   : > { %v1250_v42 = vpop.f32.mrf.mxu3 }
 0x434   : > { %1253 = vst.msk [vmem:[#allocation2] sm:$0xff] %vm1192_vm6, %v1250_v42 }
 0x436   : > { %v1437_v44 = vpop.permute.xlu1 %1436 }
 0x437   : > { %1457 = vmatpush.msrb.mxu1 %v1437_v44 }
 0x438   : > { %2002 = vmatmul.msk.f32.vlgmr.msrb.gmra.mxu1 %vm1192_vm6, %v1435_v43 }
 0x484   : > { %v1317_v45 = vpop.f32.mrf.mxu1 }
 0x485   : > { %1321 = vrot.lane.b32.xlu0 %v1317_v45, %s2551_s10 }
 0x4a9   : > { %v1388_v46 = vpop.f32.mrf.mxu3 }
 0x4aa   : > { %1392 = vrot.lane.b32.xlu2 %v1388_v46, %s2552_s14 }
 0x4b5   : > { %v1459_v47 = vpop.f32.mrf.mxu1 }
 0x4b6   : > { %1463 = vrot.lane.b32.xlu0 %v1459_v47, %s2553_s22 }
 0x4f7   : > { %v1322_v48 = vpop.permute.xlu0 %1321 }
 0x4f8   : > { %1325 = vst.msk [vmem:[#allocation2] sm:$0xff] %vm1324_vm7, %v1322_v48 }
 0x504   : > { %v1393_v49 = vpop.permute.xlu2 %1392 }
 0x505   : > { %1396 = vst.msk [vmem:[#allocation2] sm:$0xff] %vm1395_vm8, %v1393_v49 }
 0x528   : > { %v1464_v54 = vpop.permute.xlu0 %1463 }
 0x529   : > { %1467 = vst.msk [vmem:[#allocation2] sm:$0xff] %vm1466_vm9, %v1464_v54 }
 0x530   : > { %v1468_v55 = vld [vmem:[#allocation2] sm:$0xff] }
 0x531   : > { %2003 = vmatmul.msk.f32.vlgmr.msra.gmra.mxu2 %vm1063_vm1, %v1468_v55 }
 0x5b4   : > { %v1497_v57 = vpop.f32.mrf.mxu2 }
 0x5b5   : > { %v1498_v58 = vadd.f32 %v2164_v56, %v1497_v57 }
 0x5b7   : > { %v1500_v59 = vadd.f32 %v1498_v58, %v2982_v1  ;;  %v1534_v1 = vld [vmem:[%s2972_s4 + $0x8] sm:$0xff] }
 0x5b8   : > { %1566 = vmatpush.msrb.mxu3 %v1534_v1 }
 0x5b9   : > { %v1503_v60 = vsel %vm1063_vm1, %v1500_v59, 0.0 }
 0x5ba   : > { %1504 = vadd.xlane.f32.xlu1 %v1503_v60  ;;  %1567 = vmatpush.msrb.mxu3 %v1533_v5 }
 0x62d   : > { %v1505_v61 = vpop.xlane.xlu1 %1504 }
 0x62e   : > { %v1506_v62 = vmul.f32 %v1505_v61, %v2986_v9 }
 0x630   : > { %v1507_v63 = vsub.f32 %v1500_v59, %v1506_v62 }
 0x632   : > { %v1508_v0 = vmul.f32 %v1507_v63, %v1507_v63 }
 0x634   : > { %v1509_v2 = vsel %vm1063_vm1, %v1508_v0, 0.0 }
 0x635   : > { %1510 = vadd.xlane.f32.xlu2 %v1509_v2 }
 0x6a8   : > { %v1511_v10 = vpop.xlane.xlu2 %1510 }
 0x6a9   : > { %v1512_v11 = vmul.f32 %v1511_v10, %v2986_v9 }
 0x6ab   : > { %v1513_v13 = vadd.f32 1e-05, %v1512_v11 }
 0x6ad   : > { %2189 = vrsqrt.f32 %v1513_v13  ;;  %vm1520_vm11 = vweird.f32 %v1513_v13 }
 0x6b3   : > { %v2190_v15 = vpop.eup %2189 }
 0x6b4   : > { %v1515_v16 = vmul.f32 %v2190_v15, %v1513_v13  ;;  %vm1521_vm10 = vweird.f32 %v2190_v15 }
 0x6b5   : > { %vm1522_vm12 = vmor %vm1520_vm11, %vm1521_vm10 }
 0x6b6   : > { %v1516_v17 = vmul.f32 %v2190_v15, %v1515_v16 }
 0x6b8   : > { %v1517_v18 = vmul.f32 0.5, %v1516_v17 }
 0x6ba   : > { %v1518_v19 = vsub.f32 1.5, %v1517_v18 }
 0x6bc   : > { %v1519_v20 = vmul.f32 %v2190_v15, %v1518_v19 }
 0x6be   : > { %v1523_v22 = vsel %vm1522_vm12, %v2190_v15, %v1519_v20 }
 0x6bf   : > { %v1524_v23 = vmul.f32 %v1523_v22, %v1507_v63 }
 0x6c1   : > { %v1528_v25 = vmul.f32 %v2165_v21, %v1524_v23 }
 0x6c3   : > { %v1532_v26 = vadd.f32 %v2166_v24, %v1528_v25 }
 0x6c5   : > { %2004 = vmatmul.msk.f32.vlgmr.msrb.gmra.mxu3 %vm1063_vm1, %v1532_v26 }
 0x748   : > { %v1569_v31 = vpop.f32.mrf.mxu3 }
 0x749   : > { %v1570_v32 = vadd.f32 %v2167_v30, %v1569_v31 }
 0x74b   : > { %v1572_v33 = vmax.f32 %v1570_v32, 0.0 }
 0x74d   : > { %2005 = vmatmul.msk.f32.vlgmr.msra.gmra.mxu0 %vm1573_vm13, %v1572_v33 }
 0x7ca   : > { %v1594_v35 = vpop.f32.mrf.mxu0 }
 0x7cb   : > { %v1597_v36 = vadd.f32 %v1594_v35, %v1500_v59  ;;  %1607 = sbr.rel (%p2006_p1) target bundleno = 2269 (0x8dd), region = 136 }
 0x7cd   : > { %v1602_v37 = vadd.f32 %v2168_v34, %v1597_v36 }
 0x7cf   : > { %1603 = vst.msk [vmem:[%s2976_s12] sm:$0xff] %vm1063_vm1, %v1602_v37 }
 0x7d0   : > { %v1610_v38 = vsel %vm1063_vm1, %v1602_v37, 0.0  ;;  %v2191_v53 = vld [vmem:[%s3305_s25] ss:$0 sm:$0xff] }
 0x7d1   : > { %1611 = vadd.xlane.f32.xlu0 %v1610_v38 }
 0x844   : > { %v1612_v39 = vpop.xlane.xlu0 %1611 }
 0x845   : > { %v1613_v40 = vmul.f32 %v1612_v39, %v2986_v9 }
 0x847   : > { %v1614_v41 = vsub.f32 %v1602_v37, %v1613_v40 }
 0x849   : > { %v1615_v42 = vmul.f32 %v1614_v41, %v1614_v41 }
 0x84b   : > { %v1616_v43 = vsel %vm1063_vm1, %v1615_v42, 0.0 }
 0x84c   : > { %1617 = vadd.xlane.f32.xlu0 %v1616_v43 }
 0x8bf   : > { %v1618_v44 = vpop.xlane.xlu0 %1617 }
 0x8c0   : > { %v1619_v45 = vmul.f32 %v1618_v44, %v2986_v9  ;;  %v2192_v9 = vld [vmem:[%s3306_s30] ss:$0 sm:$0xff] }
 0x8c2   : > { %v1620_v46 = vadd.f32 1e-05, %v1619_v45 }
 0x8c4   : > { %2193 = vrsqrt.f32 %v1620_v46  ;;  %vm1627_vm15 = vweird.f32 %v1620_v46 }
 0x8ca   : > { %v2194_v47 = vpop.eup %2193 }
 0x8cb   : > { %v1622_v48 = vmul.f32 %v2194_v47, %v1620_v46  ;;  %vm1628_vm14 = vweird.f32 %v2194_v47 }
 0x8cc   : > { %vm1629_vm0 = vmor %vm1627_vm15, %vm1628_vm14 }
 0x8cd   : > { %v1623_v49 = vmul.f32 %v2194_v47, %v1622_v48 }
 0x8cf   : > { %v1624_v50 = vmul.f32 0.5, %v1623_v49 }
 0x8d1   : > { %v1625_v51 = vsub.f32 1.5, %v1624_v50 }
 0x8d3   : > { %v1626_v52 = vmul.f32 %v2194_v47, %v1625_v51 }
 0x8d5   : > { %v1630_v54 = vsel %vm1629_vm0, %v2194_v47, %v1626_v52 }
 0x8d6   : > { %v1631_v55 = vmul.f32 %v1630_v54, %v1614_v41 }
 0x8d8   : > { %v1635_v56 = vmul.f32 %v2191_v53, %v1631_v55 }
 0x8da   : > { %v1639_v57 = vadd.f32 %v2192_v9, %v1635_v56 }
 0x8dc   : > { %1640 = vst.msk [vmem:[%s2976_s12] sm:$0xff] %vm1063_vm1, %v1639_v57 }
 0x8dd PF: > { %s3307_s28 = sld [smem:[#allocation27_spill]]  ;;  %s1654_s14 = sshll.u32 %s2976_s12, 4  ;;  %s1655_s14 = int_to_ptr.vmem [resolvable:$true] %s1654_s14 }
 0x8de   : > { %s3309_s23 = sld [smem:[#allocation58_spill]]  ;;  %s1642_s8 = scalar_lea.sflag [#allocation5], %s2879_s13 }
 0x8e3   : > { %s2008_s15 = sshll.u32 %s3307_s28, 3 }
 0x8e4   : > { %s3310_s0 = smov %s3309_s23  ;;  %s1652_s10 = scalar_lea.hbm %s3309_s23, %s2008_s15 }
 0x8e5   : > { %s1656_s22 = sshll.u32 %s1652_s10, 4  ;;  %s2425_s5 = scalar_lea.hbm %s3310_s0, 16  ;;  %s1657_s22 = int_to_ptr.hbm [resolvable:$true] %s1656_s22 }
 0x8e6   : > { %s2419_s17 = sshra.s32 %s1657_s22, 4  ;;  %s2420_s17 = int_to_ptr.hbm [resolvable:$true] %s2419_s17 }
 0x8e7   : > { %s2421_s19 = scalar_lea.hbm %s2420_s17, 8  ;;  %p2426_p4 = scmp.lt.s32.totalorder %s2420_s17, %s3310_s0 }
 0x8e8   : > { %p2422_p0 = scmp.ne.s32.totalorder %s2420_s17, %s2421_s19  ;;  %p2427_p6 = scmp.lt.s32.totalorder %s2425_s5, %s2421_s19 }
 0x8ea   : > { %p2423_p2 = pnand %p2422_p0, %p2751_p12  ;;  %p2428_p7 = por %p2427_p6, %p2426_p4 }
 0x8ec   : > { %p2424_p3 = pneg %p2423_p2 }
 0x8ee   : > { %p2429_p8 = pnand %p2428_p7, %p2424_p3 }
 0x8f0   : > { %2432 = shalt.err (!%p2429_p8)
}
 0x8f1   : > { %2031 = dma.vmem_to_hbm [thread:$0]  (%p2751_p12), %s1655_s14, 128, %s1657_s22, %s1642_s8  }
 0x8f2 PF: > { %s3311_s13 = sld [smem:[#allocation30_spill]] }
 0x8f3   : > { %s3312_s12 = sld [smem:[#allocation24_spill]] }
 0x8f8   : > { %p2060_p9 = scmp.ge.s32.totalorder %s3311_s13, 2 }
 0x8f9   : > { %s1668_s2 = sand.u32 1, %s3312_s12  }
 0x8fa   : > { %p2056_p10 = pnand %p2060_p9, %p2755_p13  ;;  %s1669_s24 = scalar_lea.sflag [#allocation5], %s1668_s2 }
 0x8fc   : > { %p2057_p5 = pneg %p2056_p10 }
 0x8fe   : > { %2498 = dma.done.wait (%p2057_p5), %s1669_s24, 128  }
 0x8ff   : > { %2500 = vsyncadd (%p2057_p5), %s1669_s24, 4294967168  ;;  %s45_s4 = sadd.s32 1, %s3311_s13   ;;  %s3314_s1 = sld [smem:[#allocation22_spill]] }
 0x900   : > { %p42_p11 = scmp.ge.s32.totalorder %s45_s4, 6   ;;  %s3315_s22 = sld [smem:[#allocation23_spill]] }
 0x901   : > { %s3316_s23 = sld [smem:[#allocation35_spill]] }
 0x902   : > { %s3317_s24 = sld [smem:[#allocation25_spill]] }
 0x903   : > { %s3318_s2 = sld [smem:[#allocation26_spill]] }
 0x904   : > { %s3319_s25 = sld [smem:[#allocation36_spill]]  ;;  %44 = sbr.rel (!%p42_p11) target bundleno = 37 (0x25), region = 258 }
 0x905   : > { %s3320_s3 = sld [smem:[#allocation28_spill]] }
 0x906   : > { %s3321_s26 = sld [smem:[#allocation29_spill]] }
 0x907   : > { %s3322_s27 = sld [smem:[#allocation33_spill]] }
 0x908   : > { %s3323_s28 = sld [smem:[#allocation34_spill]] }
 0x909   :  { %1675 = vsyncpa [#allocation4], 1 }
 0x90a   :  { %1677 = vsyncpa [#allocation4 + $0x1], 1 }
 0x90b   :  { %1678 = vsyncpa [#allocation7], 1 }
 0x90c   :  { %1680 = vsyncpa [#allocation7 + $0x1], 1 }
 0x90d   :  { %1681 = vsyncpa [#allocation10], 1 }
 0x90e   :  { %1683 = vsyncpa [#allocation10 + $0x1], 1 }
 0x90f   :  { %1684 = vsyncpa [#allocation13], 1 }
 0x910   :  { %1686 = vsyncpa [#allocation13 + $0x1], 1 }
 0x911   :  { %1687 = vsyncpa [#allocation5], 1 }
 0x912   :  { %1689 = vsyncpa [#allocation5 + $0x1], 1 }

</bundles_post_ra>
